<compile_context>
chip_gen: v6e
topology: v6e:2x2x1
jax: 0.10.0
libtpu: 0.0.40
codegen_flags: <defaults>
</compile_context>

<pallas_src>
import jax
import jax.numpy as jnp
from jax import lax
from jax.experimental import pallas as pl
from jax.experimental.pallas import tpu as pltpu


def _cc_attention_kernel(x_ref, wqk_ref, bqk_ref, wv_ref, bv_ref, gamma_ref,
                         o_ref, q_scr, k_scr, kwh_scr, xwh_scr):
    H, W, C = x_ref.shape
    Th = o_ref.shape[0]
    C8 = wqk_ref.shape[1] // 2
    t = pl.program_id(1)
    gamma = gamma_ref[0]

    # ---- once per batch image: fused Q|K projection + column-layout scratches
    @pl.when(t == 0)
    def _precompute():
        x_full = x_ref[...]                                   # (H, W, C)
        qk = (jnp.dot(x_full.reshape(H * W, C), wqk_ref[...],
                      preferred_element_type=jnp.float32) + bqk_ref[...])
        k_hw = qk[:, C8:].reshape(H, W, C8)
        q_scr[...] = qk[:, :C8].reshape(H, W, C8)
        k_scr[...] = k_hw
        kwh_scr[...] = pltpu.einshape("abc->bac", k_hw)        # (W, H, C8)
        xwh_scr[...] = pltpu.einshape("abc->bac", x_full)      # (W, H, C)

    # ---- this grid step handles rows [h0, h0 + Th)
    h0 = pl.multiple_of(t * Th, Th)
    q = q_scr[pl.ds(h0, Th)]                                  # (Th, W, C8)
    k_rows = k_scr[pl.ds(h0, Th)]                             # (Th, W, C8)
    x_rows = x_ref[pl.ds(h0, Th)]                             # (Th, W, C)

    # width branch (attend along each row), batch dim = h
    e_w = jnp.einsum('hwc,hkc->hwk', q, k_rows,
                     preferred_element_type=jnp.float32)      # (Th, W, W)

    # height branch (attend along each column), batch dim = w
    q_wh = pltpu.einshape("abc->bac", q)                      # (W, Th, C8)
    e_h = jnp.einsum('whc,wkc->whk', q_wh, kwh_scr[...],
                     preferred_element_type=jnp.float32)      # (W, Th, H)

    # diagonal mask: pixel does not attend to itself in the height branch
    hh = h0 + lax.broadcasted_iota(jnp.int32, (Th, H), 0)
    kk = lax.broadcasted_iota(jnp.int32, (Th, H), 1)
    e_h = jnp.where((hh == kk)[None], jnp.float32(-1e30), e_h)

    # joint softmax over the concatenated (H + W) axis, coupled through a
    # shared per-pixel max / denominator (only cheap 2-D transposes needed)
    m = jnp.maximum(jnp.max(e_w, axis=-1), jnp.max(e_h, axis=-1).T)   # (Th, W)
    p_w = jnp.exp(e_w - m[:, :, None])                                # (Th, W, W)
    p_h = jnp.exp(e_h - m.T[:, :, None])                              # (W, Th, H)
    denom = jnp.sum(p_w, axis=-1) + jnp.sum(p_h, axis=-1).T           # (Th, W)
    inv = pl.reciprocal(denom)[:, :, None]                            # (Th, W, 1)

    # attention applied directly to x (value projection deferred), no att_* tensors
    ctx_w = jnp.einsum('hwk,hkc->hwc', p_w, x_rows,
                       preferred_element_type=jnp.float32)            # (Th, W, C)
    ctx_h = jnp.einsum('whk,wkc->whc', p_h, xwh_scr[...],
                       preferred_element_type=jnp.float32)            # (W, Th, C)
    ctx = (ctx_w + pltpu.einshape("abc->bac", ctx_h)) * inv           # (Th, W, C)

    # deferred value projection (wide C x C matmul) + bias + residual
    attn = (jnp.dot(ctx.reshape(Th * W, C), wv_ref[...],
                    preferred_element_type=jnp.float32) + bv_ref[...])
    out = gamma * attn.reshape(Th, W, C) + x_rows
    o_ref[...] = out.astype(o_ref.dtype)


def criss_cross_attention(x_nchw, wq, bq, wk, bk, wv, bv, gamma, *, row_block=8):
    """x_nchw: (B, C, H, W); wq/wk: (C, C//8); wv: (C, C); gamma: (1,)."""
    B, C, H, W = x_nchw.shape
    C8 = wq.shape[1]
    dt = x_nchw.dtype

    # row-tile size that divides H
    Th = max(1, min(row_block, H))
    while H % Th:
        Th -= 1
    nT = H // Th

    x_hw = jnp.transpose(x_nchw, (0, 2, 3, 1))        # (B, H, W, C) single layout
    wqk = jnp.concatenate([wq, wk], axis=1)           # (C, 2*C8) fused Q|K weight
    bqk = jnp.concatenate([bq, bk], axis=0).reshape(1, 2 * C8)

    # VMEM working-set estimate (revisited input, output tile, weights,
    # scratches, per-tile temporaries) -> scoped-VMEM limit with headroom.
    f32b = 4
    est = f32b * (2 * H * W * C            # full-image input (double-buffered)
                  + 2 * Th * W * C         # output tile (double-buffered)
                  + 2 * (C * 2 * C8 + 2 * C8 + C * C + C)
                  + 2 * H * W * C8 + W * H * C8 + W * H * C   # scratches
                  + 2 * Th * W * W + 2 * W * Th * H + 6 * Th * W * C)
    vmem_limit = int(min(max(2 * est, 32 * 1024 * 1024), 112 * 1024 * 1024))

    grid_spec = pltpu.PrefetchScalarGridSpec(
        num_scalar_prefetch=0,
        grid=(B, nT),
        in_specs=[
            # Full image; block index constant along t -> DMA'd once per batch.
            pl.BlockSpec((None, H, W, C), lambda b, t: (b, 0, 0, 0)),
            pl.BlockSpec((C, 2 * C8), lambda b, t: (0, 0)),
            pl.BlockSpec((1, 2 * C8), lambda b, t: (0, 0)),
            pl.BlockSpec((C, C), lambda b, t: (0, 0)),
            pl.BlockSpec((1, C), lambda b, t: (0, 0)),
            pl.BlockSpec(memory_space=pltpu.MemorySpace.SMEM),    # gamma scalar
        ],
        out_specs=pl.BlockSpec((None, Th, W, C), lambda b, t: (b, t, 0, 0)),
        scratch_shapes=[
            pltpu.VMEM((H, W, C8), jnp.float32),    # Q, row (HW) layout
            pltpu.VMEM((H, W, C8), jnp.float32),    # K, row (HW) layout
            pltpu.VMEM((W, H, C8), jnp.float32),    # K, column (WH) layout
            pltpu.VMEM((W, H, C), jnp.float32),     # x, column (WH) layout
        ],
    )

    out_hw = pl.pallas_call(
        _cc_attention_kernel,
        out_shape=jax.ShapeDtypeStruct((B, H, W, C), dt),
        grid_spec=grid_spec,
        compiler_params=pltpu.CompilerParams(
            dimension_semantics=("parallel", "arbitrary"),
            vmem_limit_bytes=vmem_limit),
    )(x_hw, wqk, bqk, wv, bv.reshape(1, C), gamma.reshape(1,))

    return jnp.transpose(out_hw, (0, 3, 1, 2))        # back to NCHW


def criss_cross_reference(x, wq, bq, wk, bk, wv, bv, gamma):
    """Pure-JAX transcription of the PyTorch forward (for verification)."""
    B, C, H, W = x.shape

    def conv1x1(x_, w, b):
        return jnp.einsum('bchw,cd->bdhw', x_, w) + b[None, :, None, None]

    q = conv1x1(x, wq, bq)
    k = conv1x1(x, wk, bk)
    v = conv1x1(x, wv, bv)

    energy_H = jnp.einsum('bchw,bckw->bhwk', q, k)               # (B,H,W,H)
    diag = jnp.eye(H, dtype=bool)
    energy_H = jnp.where(diag[None, :, None, :], -jnp.inf, energy_H)
    energy_W = jnp.einsum('bchw,bchk->bhwk', q, k)               # (B,H,W,W)

    concate = jax.nn.softmax(
        jnp.concatenate([energy_H, energy_W], axis=3), axis=3)
    att_H = concate[..., :H]
    att_W = concate[..., H:]

    out_H = jnp.einsum('bhwk,bckw->bchw', att_H, v)
    out_W = jnp.einsum('bhwk,bchk->bchw', att_W, v)
    return gamma[0] * (out_H + out_W) + x


if __name__ == "__main__":
    B, C, H, W = 2, 32, 8, 16
    C8 = C // 8

    key = jax.random.PRNGKey(0)
    ks = jax.random.split(key, 7)
    x = jax.random.normal(ks[0], (B, C, H, W), jnp.float32)
    wq = jax.random.normal(ks[1], (C, C8), jnp.float32) * 0.1
    bq = jax.random.normal(ks[2], (C8,), jnp.float32) * 0.1
    wk = jax.random.normal(ks[3], (C, C8), jnp.float32) * 0.1
    bk = jax.random.normal(ks[4], (C8,), jnp.float32) * 0.1
    wv = jax.random.normal(ks[5], (C, C), jnp.float32) * 0.1
    bv = jax.random.normal(ks[6], (C,), jnp.float32) * 0.1
    # PyTorch initializes gamma to 0 (output == x); use a nonzero deterministic
    # value so the attention path is actually exercised by the check below.
    gamma = jnp.array([0.5], jnp.float32)

    # row_block=4 -> 2 row tiles per image, exercising the tiled path.
    out = criss_cross_attention(x, wq, bq, wk, bk, wv, bv, gamma, row_block=4)
    out = jax.block_until_ready(out)

    ref = criss_cross_reference(x, wq, bq, wk, bk, wv, bv, gamma)
    assert out.shape == x.shape
    err = float(jnp.max(jnp.abs(out - ref)))
    assert jnp.allclose(out, ref, atol=1e-4, rtol=1e-4), f"max abs err={err}"
    print("KERNEL_OK")
</pallas_src>

<mosaic_0001>
module attributes {stable_mosaic.version = 11 : i64} {
  func.func @_cc_attention_kernel(%arg0: i32, %arg1: i32, %arg2: memref<1x8x16x32xf32, #tpu.memory_space<vmem>>, %arg3: memref<32x8xf32, #tpu.memory_space<vmem>>, %arg4: memref<1x8xf32, #tpu.memory_space<vmem>>, %arg5: memref<32x32xf32, #tpu.memory_space<vmem>>, %arg6: memref<1x32xf32, #tpu.memory_space<vmem>>, %arg7: memref<1xf32, #tpu.memory_space<smem>>, %arg8: memref<1x4x16x32xf32, #tpu.memory_space<vmem>>, %arg9: memref<8x16x4xf32, #tpu.memory_space<vmem>>, %arg10: memref<8x16x4xf32, #tpu.memory_space<vmem>>, %arg11: memref<16x8x4xf32, #tpu.memory_space<vmem>>, %arg12: memref<16x8x32xf32, #tpu.memory_space<vmem>>) attributes {dimension_semantics = [#tpu.dimension_semantics<parallel>, #tpu.dimension_semantics<arbitrary>], iteration_bounds = array<i64: 2, 2>, scalar_prefetch = 0 : i64, scratch_operands = 4 : i64, tpu.core_type = #tpu.core_type<tc>, window_params = [{transform_indices = @transform_0, window_bounds = array<i64: 1, 8, 16, 32>}, {pipeline_mode = #tpu.pipeline_mode<synchronous>, transform_indices = @transform_1, window_bounds = array<i64: 32, 8>}, {pipeline_mode = #tpu.pipeline_mode<synchronous>, transform_indices = @transform_2, window_bounds = array<i64: 1, 8>}, {pipeline_mode = #tpu.pipeline_mode<synchronous>, transform_indices = @transform_3, window_bounds = array<i64: 32, 32>}, {pipeline_mode = #tpu.pipeline_mode<synchronous>, transform_indices = @transform_4, window_bounds = array<i64: 1, 32>}, {transform_indices = @transform_5, window_bounds = array<i64: 1>}, {transform_indices = @transform_6, window_bounds = array<i64: 1, 4, 16, 32>}]} {
    %c0 = arith.constant 0 : index
    %0 = memref.load %arg7[%c0] : memref<1xf32, #tpu.memory_space<smem>>
    %c0_i32 = arith.constant 0 : i32
    %1 = arith.cmpi eq, %arg1, %c0_i32 : i32
    %2 = arith.extui %1 : i1 to i32
    %c0_i32_0 = arith.constant 0 : i32
    %3 = arith.cmpi ne, %2, %c0_i32_0 : i32
    scf.if %3 {
      %c0_31 = arith.constant 0 : index
      %c0_32 = arith.constant 0 : index
      %c0_33 = arith.constant 0 : index
      %c0_34 = arith.constant 0 : index
      %66 = vector.load %arg2[%c0_31, %c0_32, %c0_33, %c0_34] : memref<1x8x16x32xf32, #tpu.memory_space<vmem>>, vector<1x8x16x32xf32>
      %67 = vector.shape_cast %66 : vector<1x8x16x32xf32> to vector<8x16x32xf32>
      %68 = vector.shape_cast %67 : vector<8x16x32xf32> to vector<128x32xf32>
      %c0_35 = arith.constant 0 : index
      %c0_36 = arith.constant 0 : index
      %69 = vector.load %arg3[%c0_35, %c0_36] : memref<32x8xf32, #tpu.memory_space<vmem>>, vector<32x8xf32>
      %cst_37 = arith.constant dense<0.000000e+00> : vector<128x8xf32>
      %70 = tpu.matmul %68, %69, %cst_37 {dimension_numbers = #tpu.dot_dimension_numbers<[1], [0], [0], [1], [0, 0, 1, 1], [], []>} : vector<128x32xf32>, vector<32x8xf32>, vector<128x8xf32> -> vector<128x8xf32>
      %c0_38 = arith.constant 0 : index
      %c0_39 = arith.constant 0 : index
      %71 = vector.load %arg4[%c0_38, %c0_39] : memref<1x8xf32, #tpu.memory_space<vmem>>, vector<1x8xf32>
      %72 = vector.broadcast %71 : vector<1x8xf32> to vector<128x8xf32>
      %73 = arith.addf %70, %72 : vector<128x8xf32>
      %74 = vector.extract_strided_slice %73 {offsets = [0, 4], sizes = [128, 4], strides = [1, 1]} : vector<128x8xf32> to vector<128x4xf32>
      %75 = vector.shape_cast %74 : vector<128x4xf32> to vector<8x16x4xf32>
      %76 = vector.extract_strided_slice %73 {offsets = [0, 0], sizes = [128, 4], strides = [1, 1]} : vector<128x8xf32> to vector<128x4xf32>
      %77 = vector.shape_cast %76 : vector<128x4xf32> to vector<8x16x4xf32>
      %c0_40 = arith.constant 0 : index
      %c0_41 = arith.constant 0 : index
      %c0_42 = arith.constant 0 : index
      %78 = vector.load %arg9[%c0_40, %c0_41, %c0_42] : memref<8x16x4xf32, #tpu.memory_space<vmem>>, vector<8x16x4xf32>
      tpu.vector_store %arg9[%c0_40, %c0_41, %c0_42], %77 {strides = array<i32>} : memref<8x16x4xf32, #tpu.memory_space<vmem>>, vector<8x16x4xf32>,
      %c0_43 = arith.constant 0 : index
      %c0_44 = arith.constant 0 : index
      %c0_45 = arith.constant 0 : index
      %79 = vector.load %arg10[%c0_43, %c0_44, %c0_45] : memref<8x16x4xf32, #tpu.memory_space<vmem>>, vector<8x16x4xf32>
      tpu.vector_store %arg10[%c0_43, %c0_44, %c0_45], %75 {strides = array<i32>} : memref<8x16x4xf32, #tpu.memory_space<vmem>>, vector<8x16x4xf32>,
      %80 = tpu.transpose %75, [1, 0, 2] : vector<8x16x4xf32> -> vector<16x8x4xf32>
      %c0_46 = arith.constant 0 : index
      %c0_47 = arith.constant 0 : index
      %c0_48 = arith.constant 0 : index
      %81 = vector.load %arg11[%c0_46, %c0_47, %c0_48] : memref<16x8x4xf32, #tpu.memory_space<vmem>>, vector<16x8x4xf32>
      tpu.vector_store %arg11[%c0_46, %c0_47, %c0_48], %80 {strides = array<i32>} : memref<16x8x4xf32, #tpu.memory_space<vmem>>, vector<16x8x4xf32>,
      %82 = tpu.transpose %67, [1, 0, 2] : vector<8x16x32xf32> -> vector<16x8x32xf32>
      %c0_49 = arith.constant 0 : index
      %c0_50 = arith.constant 0 : index
      %c0_51 = arith.constant 0 : index
      %83 = vector.load %arg12[%c0_49, %c0_50, %c0_51] : memref<16x8x32xf32, #tpu.memory_space<vmem>>, vector<16x8x32xf32>
      tpu.vector_store %arg12[%c0_49, %c0_50, %c0_51], %82 {strides = array<i32>} : memref<16x8x32xf32, #tpu.memory_space<vmem>>, vector<16x8x32xf32>,
    } else {
    }
    %c4_i32 = arith.constant 4 : i32
    %4 = arith.muli %arg1, %c4_i32 : i32
    %5 = tpu.assume_multiple %4, 4 : i32
    %6 = arith.index_cast %5 : i32 to index
    %c0_1 = arith.constant 0 : index
    %c0_2 = arith.constant 0 : index
    %7 = vector.load %arg9[%6, %c0_1, %c0_2] : memref<8x16x4xf32, #tpu.memory_space<vmem>>, vector<4x16x4xf32>
    %8 = arith.index_cast %5 : i32 to index
    %c0_3 = arith.constant 0 : index
    %c0_4 = arith.constant 0 : index
    %9 = vector.load %arg10[%8, %c0_3, %c0_4] : memref<8x16x4xf32, #tpu.memory_space<vmem>>, vector<4x16x4xf32>
    %c0_5 = arith.constant 0 : index
    %10 = arith.index_cast %5 : i32 to index
    %c0_6 = arith.constant 0 : index
    %c0_7 = arith.constant 0 : index
    %11 = vector.load %arg2[%c0_5, %10, %c0_6, %c0_7] : memref<1x8x16x32xf32, #tpu.memory_space<vmem>>, vector<1x4x16x32xf32>
    %12 = vector.shape_cast %11 : vector<1x4x16x32xf32> to vector<4x16x32xf32>
    "tpu.trace_start"() <{level = 10 : i32, message = "hwc,hkc->hwk"}> : () -> ()
    %cst = arith.constant dense<0.000000e+00> : vector<4x16x16xf32>
    %13 = tpu.matmul %7, %9, %cst {dimension_numbers = #tpu.dot_dimension_numbers<[2], [2], [1], [1], [0, 0, 0, 1, 1, 1], [0], [0]>} : vector<4x16x4xf32>, vector<4x16x4xf32>, vector<4x16x16xf32> -> vector<4x16x16xf32>
    "tpu.trace_stop"() : () -> ()
    %14 = tpu.transpose %7, [1, 0, 2] : vector<4x16x4xf32> -> vector<16x4x4xf32>
    %c0_8 = arith.constant 0 : index
    %c0_9 = arith.constant 0 : index
    %c0_10 = arith.constant 0 : index
    %15 = vector.load %arg11[%c0_8, %c0_9, %c0_10] : memref<16x8x4xf32, #tpu.memory_space<vmem>>, vector<16x8x4xf32>
    "tpu.trace_start"() <{level = 10 : i32, message = "whc,wkc->whk"}> : () -> ()
    %cst_11 = arith.constant dense<0.000000e+00> : vector<16x4x8xf32>
    %16 = tpu.matmul %14, %15, %cst_11 {dimension_numbers = #tpu.dot_dimension_numbers<[2], [2], [1], [1], [0, 0, 0, 1, 1, 1], [0], [0]>} : vector<16x4x4xf32>, vector<16x8x4xf32>, vector<16x4x8xf32> -> vector<16x4x8xf32>
    "tpu.trace_stop"() : () -> ()
    %17 = tpu.iota {dimensions = array<i32: 0>} : vector<4x8xi32>
    %18 = vector.broadcast %5 : i32 to vector<4x8xi32>
    %19 = arith.addi %18, %17 : vector<4x8xi32>
    %20 = tpu.iota {dimensions = array<i32: 1>} : vector<4x8xi32>
    %21 = arith.cmpi eq, %19, %20 : vector<4x8xi32>
    %22 = vector.shape_cast %21 : vector<4x8xi1> to vector<1x4x8xi1>
    %cst_12 = arith.constant -1.000000e+30 : f32
    %23 = vector.shape_cast %22 : vector<1x4x8xi1> to vector<1x4x8xi1>
    %24 = vector.broadcast %23 : vector<1x4x8xi1> to vector<16x4x8xi1>
    %25 = vector.broadcast %cst_12 : f32 to vector<16x4x8xf32>
    %26 = arith.select %24, %25, %16 : vector<16x4x8xi1>, vector<16x4x8xf32>
    %cst_13 = arith.constant dense<0xFF800000> : vector<4x16xf32>
    %27 = vector.multi_reduction <maximumf>, %13, %cst_13 [2] : vector<4x16x16xf32> to vector<4x16xf32>
    %cst_14 = arith.constant dense<0xFF800000> : vector<16x4xf32>
    %28 = vector.multi_reduction <maximumf>, %26, %cst_14 [2] : vector<16x4x8xf32> to vector<16x4xf32>
    %29 = tpu.transpose %28, [1, 0] : vector<16x4xf32> -> vector<4x16xf32>
    %30 = arith.maximumf %27, %29 : vector<4x16xf32>
    %31 = vector.shape_cast %30 : vector<4x16xf32> to vector<4x16x1xf32>
    %32 = vector.broadcast %31 : vector<4x16x1xf32> to vector<4x16x16xf32>
    %33 = arith.subf %13, %32 : vector<4x16x16xf32>
    %34 = math.exp %33 : vector<4x16x16xf32>
    %35 = tpu.transpose %30, [1, 0] : vector<4x16xf32> -> vector<16x4xf32>
    %36 = vector.shape_cast %35 : vector<16x4xf32> to vector<16x4x1xf32>
    %37 = vector.broadcast %36 : vector<16x4x1xf32> to vector<16x4x8xf32>
    %38 = arith.subf %26, %37 : vector<16x4x8xf32>
    %39 = math.exp %38 : vector<16x4x8xf32>
    %cst_15 = arith.constant dense<0.000000e+00> : vector<4x16xf32>
    %40 = vector.multi_reduction <add>, %34, %cst_15 [2] : vector<4x16x16xf32> to vector<4x16xf32>
    %cst_16 = arith.constant dense<0.000000e+00> : vector<16x4xf32>
    %41 = vector.multi_reduction <add>, %39, %cst_16 [2] : vector<16x4x8xf32> to vector<16x4xf32>
    %42 = tpu.transpose %41, [1, 0] : vector<16x4xf32> -> vector<4x16xf32>
    %43 = arith.addf %40, %42 : vector<4x16xf32>
    %44 = tpu.reciprocal %43 : vector<4x16xf32> -> vector<4x16xf32>
    %45 = vector.shape_cast %44 : vector<4x16xf32> to vector<4x16x1xf32>
    "tpu.trace_start"() <{level = 10 : i32, message = "hwk,hkc->hwc"}> : () -> ()
    %cst_17 = arith.constant dense<0.000000e+00> : vector<4x16x32xf32>
    %46 = tpu.matmul %34, %12, %cst_17 {dimension_numbers = #tpu.dot_dimension_numbers<[2], [1], [1], [2], [0, 0, 0, 1, 1, 2], [0], [0]>} : vector<4x16x16xf32>, vector<4x16x32xf32>, vector<4x16x32xf32> -> vector<4x16x32xf32>
    "tpu.trace_stop"() : () -> ()
    %c0_18 = arith.constant 0 : index
    %c0_19 = arith.constant 0 : index
    %c0_20 = arith.constant 0 : index
    %47 = vector.load %arg12[%c0_18, %c0_19, %c0_20] : memref<16x8x32xf32, #tpu.memory_space<vmem>>, vector<16x8x32xf32>
    "tpu.trace_start"() <{level = 10 : i32, message = "whk,wkc->whc"}> : () -> ()
    %cst_21 = arith.constant dense<0.000000e+00> : vector<16x4x32xf32>
    %48 = tpu.matmul %39, %47, %cst_21 {dimension_numbers = #tpu.dot_dimension_numbers<[2], [1], [1], [2], [0, 0, 0, 1, 1, 2], [0], [0]>} : vector<16x4x8xf32>, vector<16x8x32xf32>, vector<16x4x32xf32> -> vector<16x4x32xf32>
    "tpu.trace_stop"() : () -> ()
    %49 = tpu.transpose %48, [1, 0, 2] : vector<16x4x32xf32> -> vector<4x16x32xf32>
    %50 = arith.addf %46, %49 : vector<4x16x32xf32>
    %51 = vector.broadcast %45 : vector<4x16x1xf32> to vector<4x16x32xf32>
    %52 = arith.mulf %50, %51 : vector<4x16x32xf32>
    %53 = vector.shape_cast %52 : vector<4x16x32xf32> to vector<64x32xf32>
    %c0_22 = arith.constant 0 : index
    %c0_23 = arith.constant 0 : index
    %54 = vector.load %arg5[%c0_22, %c0_23] : memref<32x32xf32, #tpu.memory_space<vmem>>, vector<32x32xf32>
    %cst_24 = arith.constant dense<0.000000e+00> : vector<64x32xf32>
    %55 = tpu.matmul %53, %54, %cst_24 {dimension_numbers = #tpu.dot_dimension_numbers<[1], [0], [0], [1], [0, 0, 1, 1], [], []>} : vector<64x32xf32>, vector<32x32xf32>, vector<64x32xf32> -> vector<64x32xf32>
    %c0_25 = arith.constant 0 : index
    %c0_26 = arith.constant 0 : index
    %56 = vector.load %arg6[%c0_25, %c0_26] : memref<1x32xf32, #tpu.memory_space<vmem>>, vector<1x32xf32>
    %57 = vector.broadcast %56 : vector<1x32xf32> to vector<64x32xf32>
    %58 = arith.addf %55, %57 : vector<64x32xf32>
    %59 = vector.shape_cast %58 : vector<64x32xf32> to vector<4x16x32xf32>
    %60 = vector.broadcast %0 : f32 to vector<4x16x32xf32>
    %61 = arith.mulf %60, %59 : vector<4x16x32xf32>
    %62 = arith.addf %61, %12 : vector<4x16x32xf32>
    %c0_27 = arith.constant 0 : index
    %c0_28 = arith.constant 0 : index
    %c0_29 = arith.constant 0 : index
    %c0_30 = arith.constant 0 : index
    %63 = vector.load %arg8[%c0_27, %c0_28, %c0_29, %c0_30] : memref<1x4x16x32xf32, #tpu.memory_space<vmem>>, vector<1x4x16x32xf32>
    %64 = vector.shape_cast %63 : vector<1x4x16x32xf32> to vector<4x16x32xf32>
    %65 = vector.shape_cast %62 : vector<4x16x32xf32> to vector<1x4x16x32xf32>
    tpu.vector_store %arg8[%c0_27, %c0_28, %c0_29, %c0_30], %65 {strides = array<i32>} : memref<1x4x16x32xf32, #tpu.memory_space<vmem>>, vector<1x4x16x32xf32>,
    return
  }
  func.func @transform_0(%arg0: i32, %arg1: i32) -> (i32, i32, i32, i32) {
    %c0_i32 = arith.constant 0 : i32
    %c0_i32_0 = arith.constant 0 : i32
    %c0_i32_1 = arith.constant 0 : i32
    %c0_i32_2 = arith.constant 0 : i32
    return %arg0, %c0_i32, %c0_i32_0, %c0_i32_1 : i32, i32, i32, i32
  }
  func.func @transform_1(%arg0: i32, %arg1: i32) -> (i32, i32) {
    %c0_i32 = arith.constant 0 : i32
    %c0_i32_0 = arith.constant 0 : i32
    %c0_i32_1 = arith.constant 0 : i32
    return %c0_i32, %c0_i32_0 : i32, i32
  }
  func.func @transform_2(%arg0: i32, %arg1: i32) -> (i32, i32) {
    %c0_i32 = arith.constant 0 : i32
    %c0_i32_0 = arith.constant 0 : i32
    %c0_i32_1 = arith.constant 0 : i32
    return %c0_i32, %c0_i32_0 : i32, i32
  }
  func.func @transform_3(%arg0: i32, %arg1: i32) -> (i32, i32) {
    %c0_i32 = arith.constant 0 : i32
    %c0_i32_0 = arith.constant 0 : i32
    %c0_i32_1 = arith.constant 0 : i32
    return %c0_i32, %c0_i32_0 : i32, i32
  }
  func.func @transform_4(%arg0: i32, %arg1: i32) -> (i32, i32) {
    %c0_i32 = arith.constant 0 : i32
    %c0_i32_0 = arith.constant 0 : i32
    %c0_i32_1 = arith.constant 0 : i32
    return %c0_i32, %c0_i32_0 : i32, i32
  }
  func.func @transform_5(%arg0: i32, %arg1: i32) -> i32 {
    %c0_i32 = arith.constant 0 : i32
    %c0_i32_0 = arith.constant 0 : i32
    return %c0_i32 : i32
  }
  func.func @transform_6(%arg0: i32, %arg1: i32) -> (i32, i32, i32, i32) {
    %c0_i32 = arith.constant 0 : i32
    %c0_i32_0 = arith.constant 0 : i32
    %c0_i32_1 = arith.constant 0 : i32
    return %arg0, %arg1, %c0_i32, %c0_i32_0 : i32, i32, i32, i32
  }
}

</mosaic_0001>

<bundles_post_ra>
// kernel: tpu_custom_call.1
= control target key start
LH: loop header
LB: loop body
LE: loop exit
PB: predicated region body
PF: predicated region fallthrough
CT: control target
= control target key end

     0   :  { %s7841_s0 = inlined_call_operand.hbm [shape: f32[2,8,16,32], index: 0, kind: input, shape index: {}]   ;;  %s7842_s1 = inlined_call_operand.vmem [shape: f32[32,8], index: 1, kind: input, shape index: {}]   ;;  %s7843_s2 = inlined_call_operand.vmem [shape: f32[1,8], index: 2, kind: input, shape index: {}]   ;;  %s7844_s3 = inlined_call_operand.vmem [shape: f32[32,32], index: 3, kind: input, shape index: {}]   ;;  %s7845_s4 = inlined_call_operand.vmem [shape: f32[1,32], index: 4, kind: input, shape index: {}]   ;;  %s7846_s5 = inlined_call_operand.<no memory space> [shape: f32[1], index: 5, kind: input, shape index: {}]   ;;  %s7847_s6 = inlined_call_operand.hbm [shape: f32[2,8,16,32], index: 6, kind: output, shape index: {}]  }
   0x1   :  { %7853 = sst [smem:[#allocation17_spill]] %s7847_s6 }
   0x2   :  { %11 = sst [smem:[#allocation6]] %s7846_s5 }
   0x3   :  { %12 = vsyncpa [#allocation8], 0 }
   0x4   :  { %14 = vsyncpa [#allocation8 + $0x1], 0 }
   0x5   :  { %15 = vsyncpa [#allocation9], 0 }
   0x6   :  { %17 = vsyncpa [#allocation9 + $0x1], 0  ;;  %s6669_s23 = smov 0   ;;  %s6671_s24 = smov 0  }
   0x7   :  { %s6673_s25 = smov 0   ;;  %s6675_s26 = smov 0  }
   0x8   :  { %s6677_s27 = smov 0   ;;  %s6679_s28 = smov 0  }
   0x9   :  { %s6681_s29 = smov 0   ;;  %s6683_s30 = smov 0  }
   0xa   :  { %s6685_s5 = smov 0   ;;  %s6687_s7 = smov 0  }
   0xb   :  { %s6689_s8 = smov 0  }
   0xc LB: > { %7854 = sst [smem:[#allocation13_spill]] %s6607_s5  ;;  %s5762_s9 = sadd.s32 4294967295, %s6615_s8   ;;  %s6615_s8 = sphi %s6689_s8, %s23_s8   ;;  %s6611_s7 = sphi %s6687_s7, %s7869_s7   ;;  %s6607_s5 = sphi %s6685_s5, %s7868_s5   ;;  %s6603_s30 = sphi %s6683_s30, %s7867_s30   ;;  %s6599_s29 = sphi %s6681_s29, %s7866_s29   ;;  %s6595_s28 = sphi %s6679_s28, %s7875_s28   ;;  %s6591_s27 = sphi %s6677_s27, %s7874_s27   ;;  %s6587_s26 = sphi %s6675_s26, %s7873_s26   ;;  %s6583_s25 = sphi %s6673_s25, %s7872_s25   ;;  %s6579_s24 = sphi %s6671_s24, %s7871_s24   ;;  %s6575_s23 = sphi %s6669_s23, %s7870_s23  }
   0xd   : > { %7855 = sst [smem:[#allocation14_spill]] %s6611_s7  ;;  %s5763_s10 = sadd.s32 4294967294, %s6615_s8  }
   0xe   : > { %s32_s11 = sadd.s32 1, %s6607_s5  ;;  %s35_s12 = sadd.s32 1, %s6611_s7 }
   0xf   : > { %p33_p0 = scmp.ge.s32.totalorder %s32_s11, 2  ;;  %s42_s13 = sadd.s32 1, %s6595_s28 }
  0x10   : > { %p49_p1 = scmp.ne.s32.totalorder %s6595_s28, %s6591_s27  ;;  %p50_p2 = scmp.eq.s32.totalorder %s6615_s8, 0 }
  0x11   : > { %s7877_s11 = smov (%p33_p0, %s32_s11), 0  ;;  %s7879_s12 = smov (!%p33_p0, %s35_s12), %s6611_s7 }
  0x12   : > { %7856 = sst [smem:[#allocation15_spill]] %s7877_s11  ;;  %p6733_p3 = por %p50_p2, %p49_p1 }
  0x13   : > { %p55_p4 = scmp.ne.s32.totalorder %s6591_s27, %s6587_s26  ;;  %p37_p5 = scmp.ge.s32.totalorder %s7879_s12, 2 }
  0x14   : > { %p56_p6 = scmp.eq.s32.totalorder %s5762_s9, 0  ;;  %s171_s15 = ssub.s32 %s6607_s5, %s7877_s11 }
  0x15   : > { %s175_s16 = sadd.s32 1, %s6583_s25  ;;  %s7881_s12 = smov (%p37_p5, %s7879_s12), 0 }
  0x16   : > { %7858 = sst [smem:[#allocation16_spill]] %s7881_s12  ;;  %p6743_p7 = por %p56_p6, %p55_p4 }
  0x17   : > { %p185_p8 = scmp.ne.s32.totalorder %s6583_s25, %s6579_s24  ;;  %s39_s18 = ssub.s32 %s6611_s7, %s7881_s12 }
  0x18   : > { %p186_p9 = scmp.eq.s32.totalorder %s5762_s9, 3  ;;  %p40_p10 = scmp.eq.s32.totalorder %s39_s18, 0 }
  0x19   : > { %s172_s19 = sor.u32 %s171_s15, %s39_s18  ;;  %p191_p13 = scmp.ne.s32.totalorder %s6579_s24, %s6575_s23 }
  0x1a   : > { %p173_p11 = scmp.eq.s32.totalorder %s172_s19, 0  ;;  %p6751_p12 = por %p186_p9, %p185_p8 }
  0x1b   : > { %s6756_s21 = scalar_select %p40_p10, %s6595_s28, %s42_s13  }
  0x1c   : > { %s6759_s22 = scalar_select %p173_p11, %s6583_s25, %s175_s16  }
  0x1d   : > { %p192_p0 = scmp.eq.s32.totalorder %s5763_s10, 3  ;;  %p6299_p1 = scmp.lt.s32.totalorder %s6615_s8, 4 }
  0x1e   : > { %s227_s9 = sand.u32 1, %s6595_s28   ;;  %s5880_s18 = sshll.u32 %s6611_s7, 11 }
  0x1f   : > { %p6764_p2 = por %p192_p0, %p191_p13  ;;  %s5766_s15 = sshll.u32 %s227_s9, 7 }
  0x20   : > { %s237_s11 = scalar_lea.hbm %s7841_s0, %s5880_s18  ;;  %s231_s5 = scalar_lea.vmem [#allocation7], %s5766_s15 }
  0x21   : > { %s238_s6 = sshll.u32 %s231_s5, 4  ;;  %p6775_p4 = pnand %p6299_p1, %p6733_p3  ;;  %s239_s6 = int_to_ptr.vmem [resolvable:$true] %s238_s6 }
  0x22   : > { %p5769_p5 = scmp.ge.s32.totalorder %s6615_s8, 1  ;;  %s228_s10 = scalar_lea.sflag [#allocation8], %s227_s9 }
  0x23   : > { %p6469_p6 = pneg %p6775_p4  ;;  %s6480_s16 = scalar_lea.vmem %s239_s6, 2048 }
  0x24   : > { %p6481_p8 = scmp.ne.s32.totalorder %s239_s6, %s6480_s16  ;;  %s6617_s7 = smov [#allocation7]  }
  0x25   : > { %s6485_s12 = sshll.u32 %s6617_s7, 4  ;;  %s6486_s12 = int_to_ptr.vmem [resolvable:$false] %s6485_s12 }
  0x26   : > { %p6483_p9 = pnand %p6481_p8, %p6469_p6  ;;  %s6487_s15 = scalar_lea.vmem %s6486_s12, 4096 }
  0x27   : > { %p6488_p11 = scmp.lt.s32.totalorder %s239_s6, %s6486_s12  ;;  %p6489_p13 = scmp.lt.s32.totalorder %s6487_s15, %s6480_s16 }
  0x28   : > { %p6484_p10 = pneg %p6483_p9 }
  0x29   : > { %p6490_p0 = por %p6489_p13, %p6488_p11 }
  0x2b   : > { %p6491_p3 = pnand %p6490_p0, %p6484_p10 }
  0x2d   : > { %6494 = shalt.err (!%p6491_p3)
}
  0x2e   : > { %s6618_s5 = smov 128   ;;  %s6619_s14 = smov 8  }
  0x2f   : > { %6294 = dma.hbm_to_vmem [thread:$0]  (!%p6775_p4), %s237_s11, 2048, %s239_s6, %s228_s10, %s6618_s5, %s6618_s5, %s6619_s14  }
  0x30   : > { %p246_p1 = scmp.lt.s32.totalorder %s6615_s8, 5 }
  0x32   : > { %p247_p6 = pnand %p5769_p5, %p246_p1 }
  0x33   : > { %s252_s7 = sand.u32 (!%p247_p6), 1, %s6591_s27  }
  0x34   : > { %250 = sbr.rel (%p247_p6) target bundleno = 2292 (0x8f4), region = 44  ;;  %s5770_s9 = sshll.u32 (!%p247_p6), %s252_s7, 7 }
  0x35   : > { %s253_s18 = scalar_lea.sflag (!%p247_p6), [#allocation8], %s252_s7  ;;  %s6788_s19 = scalar_lea.vmem (!%p247_p6), [#allocation7], %s5770_s9 }
  0x39   : > { %6566 = dma.done.wait (%p6743_p7), %s253_s18, 2048  }
  0x3a   : > { %6568 = vsyncadd (%p6743_p7), %s253_s18, 4294965248  ;;  %s282_s13 = sand.u32 1, %s6579_s24   ;;  %s6795_s6 = sld [smem:[#allocation6]] }
  0x3b   : > { %s5771_s11 = sshll.u32 %s282_s13, 6  ;;  %p5772_p4 = scmp.ne.s32.totalorder %s6599_s29, 0 }
  0x3c   : > { %s6799_s10 = scalar_lea.vmem [#allocation10], %s5771_s11  ;;  %s6622_s16 = smov (!%p5772_p4), 124  }
  0x3d   : > { %290 = sbr.rel (%p5772_p4) target bundleno = 434 (0x1b2), region = 52 }
  0x42   : > { %v310_v0 = vld [vmem:[%s7842_s1 + $0x18] sm:$0xff]  ;;  %v309_v1 = vld [vmem:[%s7842_s1 + $0x10] sm:$0xff]  ;;  %v614_v2 = vlaneseq  ;;  %v6620_v3 = vmov 1983009808   ;;  %v308_v5 = vld [vmem:[%s7842_s1 + $0x8] sm:$0xff]  ;;  %vm318_vm0 = vcmask 261120  }
  0x43   : > { %6011 = vmatprep.subr.mxu0 %v310_v0  ;;  %6279 = vmatprep.subr.mxu1 %v310_v0  ;;  %v612_v4 = vunpack.c.l.s4 %v6620_v3  ;;  %v307_v7 = vld [vmem:[%s7842_s1] sm:$0xff]  ;;  %v6621_v9 = vmov 1934713408   ;;  %v292_v14 = vld [vmem:[%s6788_s19 + $0x8] sm:$0xff]  ;;  %v293_v27 = vld [vmem:[%s6788_s19 + $0x10] sm:$0xff]  ;;  %vm512_vm1 = vcmask 31744  }
  0x44   : > { %6012 = vmatpush3.msra.mxu0 %v310_v0  ;;  %6283 = vmatpush3.msra.mxu1 %v310_v0  ;;  %v615_v6 = vshrl.u32 %v614_v2, 7  ;;  %v676_v10 = vunpack.c.l.s4 %v6621_v9  ;;  %v291_v11 = vld [vmem:[%s6788_s19] sm:$0xff]  ;;  %v6825_v18 = vld [vmem:[%s6788_s19 + $0x28] sm:$0xff]  ;;  %v301_v28 = vld [vmem:[%s6788_s19 + $0x50] sm:$0xff] }
  0x45   : > { %6013 = vmatprep.subr.mxu0 %v309_v1  ;;  %6280 = vmatprep.subr.mxu1 %v309_v1  ;;  %v613_v8 = vunpack.c.0.s8 %v612_v4  ;;  %v299_v12 = vld [vmem:[%s6788_s19 + $0x40] sm:$0xff]  ;;  %v1033_v20 = vcombine.low %v292_v14, %v6825_v18  ;;  %v1034_v21 = vcombine.high %v292_v14, %v6825_v18  ;;  %v300_v23 = vld [vmem:[%s6788_s19 + $0x48] sm:$0xff]  ;;  %v297_v36 = vld [vmem:[%s6788_s19 + $0x30] sm:$0xff] }
  0x46   : > { %6014 = vmatpush3.msra.mxu0 %v309_v1  ;;  %6284 = vmatpush3.msra.mxu1 %v309_v1  ;;  %v6817_v13 = vld [vmem:[%s6788_s19 + $0x20] sm:$0xff]  ;;  %v677_v26 = vunpack.c.0.s8 %v676_v10  ;;  %v304_v32 = vld [vmem:[%s6788_s19 + $0x68] sm:$0xff]  ;;  %v294_v37 = vld [vmem:[%s6788_s19 + $0x18] sm:$0xff]  ;;  %v913_v39 = vcombine.low %v293_v27, %v297_v36  ;;  %v914_v40 = vcombine.high %v293_v27, %v297_v36 }
  0x47   : > { %6015 = vmatprep.subr.mxu0 %v308_v5  ;;  %6281 = vmatprep.subr.mxu1 %v308_v5  ;;  %v6820_v15 = vsub.s32 %v613_v8, %v615_v6  ;;  %v897_v16 = vcombine.low %v291_v11, %v6817_v13  ;;  %v898_v17 = vcombine.high %v291_v11, %v6817_v13  ;;  %v303_v19 = vld [vmem:[%s6788_s19 + $0x60] sm:$0xff]  ;;  %v298_v41 = vld [vmem:[%s6788_s19 + $0x38] sm:$0xff]  ;;  %v305_v50 = vld [vmem:[%s6788_s19 + $0x70] sm:$0xff] }
  0x48   : > { %6016 = vmatpush3.msra.mxu0 %v308_v5  ;;  %6285 = vmatpush3.msra.mxu1 %v308_v5  ;;  %v929_v22 = vcombine.low %v299_v12, %v303_v19  ;;  %v930_v25 = vcombine.high %v299_v12, %v303_v19  ;;  %v1065_v34 = vcombine.low %v300_v23, %v304_v32  ;;  %v302_v42 = vld [vmem:[%s6788_s19 + $0x58] sm:$0xff] }
  0x49   : > { %6017 = vmatprep.subr.mxu0 %v307_v7  ;;  %6282 = vmatprep.subr.mxu1 %v307_v7  ;;  %v905_v24 = vrot.slane %v897_v16, %v6820_v15  ;;  %v912_v29 = vrot.slane %v898_v17, %v6820_v15  ;;  %v1041_v30 = vrot.slane %v1033_v20, %v6820_v15  ;;  %v306_v51 = vld [vmem:[%s6788_s19 + $0x78] sm:$0xff] }
  0x4a   : > { %6018 = vmatpush3.msra.mxu0 %v307_v7  ;;  %6286 = vmatpush3.msra.mxu1 %v307_v7  ;;  %v6837_v31 = vrot.slane %v1034_v21, %v6820_v15  ;;  %v6843_v33 = vrot.slane %v929_v22, %v6820_v15  ;;  %v1066_v35 = vcombine.high %v300_v23, %v304_v32 }
  0x4b   : > { %6019 = vmatprep.mubr.msk.f32.mxu0 %vm318_vm0, %v291_v11  ;;  %6031 = vmatprep.mubr.msk.f32.mxu1 %vm318_vm0, %v299_v12  ;;  %v944_v38 = vrot.slane %v930_v25, %v6820_v15  ;;  %v1073_v43 = vrot.slane %v1065_v34, %v6820_v15  ;;  %v6855_v44 = vsub.s32 %v677_v26, %v615_v6 }
  0x4c   : > { %6020 = vmatmul.mubr.msk.f32.vlgmr.msra.gmra.mxu0 %vm318_vm0, %v292_v14  ;;  %6032 = vmatmul.mubr.msk.f32.vlgmr.msra.gmra.mxu1 %vm318_vm0, %v300_v23  ;;  %v1049_v45 = vcombine.low %v294_v37, %v298_v41  ;;  %v6858_v46 = vrot.slane %v1066_v35, %v6820_v15  ;;  %v921_v47 = vrot.slane %v913_v39, %v6820_v15 }
  0x4d   : > { %6022 = vmatprep.mubr.msk.f32.mxu0 %vm318_vm0, %v293_v27  ;;  %6034 = vmatprep.mubr.msk.f32.mxu1 %vm318_vm0, %v301_v28  ;;  %v928_v48 = vrot.slane %v914_v40, %v6820_v15  ;;  %v1050_v49 = vcombine.high %v294_v37, %v298_v41  ;;  %v945_v53 = vcombine.low %v301_v28, %v305_v50 }
  0x4e   : > { %v1057_v52 = vrot.slane %v1049_v45, %v6820_v15  ;;  %v946_v54 = vcombine.high %v301_v28, %v305_v50  ;;  %v1081_v55 = vcombine.low %v302_v42, %v306_v51  ;;  %v961_v56 = vcombine.low %v905_v24, %v921_v47 }
  0x4f   : > { %v962_v57 = vcombine.high %v905_v24, %v921_v47  ;;  %v977_v58 = vcombine.low %v912_v29, %v928_v48  ;;  %v978_v59 = vcombine.high %v912_v29, %v928_v48  ;;  %v1064_v60 = vrot.slane %v1050_v49, %v6820_v15  ;;  %v5773_v48 = vld [vmem:[%s7843_s2] ss:$0 sm:$0xff] }
  0x50   : > { %6023 = vmatmul.mubr.msk.f32.gmra.mxu0 %vm318_vm0, %v294_v37  ;;  %6035 = vmatmul.mubr.msk.f32.gmra.mxu1 %vm318_vm0, %v302_v42  ;;  %v1097_v61 = vcombine.low %v1041_v30, %v1057_v52  ;;  %v969_v62 = vrot.slane %v961_v56, %v6855_v44  ;;  %v1098_v0 = vcombine.high %v1041_v30, %v1057_v52 }
  0x51   : > { %6025 = vmatprep.mubr.msk.f32.mxu0 %vm318_vm0, %v6817_v13  ;;  %6037 = vmatprep.mubr.msk.f32.mxu1 %vm318_vm0, %v303_v19  ;;  %v976_v63 = vrot.slane %v962_v57, %v6855_v44  ;;  %v1082_v1 = vcombine.high %v302_v42, %v306_v51  ;;  %v985_v2 = vrot.slane %v977_v58, %v6855_v44 }
  0x52   : > { %v992_v3 = vrot.slane %v978_v59, %v6855_v44  ;;  %v1113_v4 = vcombine.low %v6837_v31, %v1064_v60  ;;  %v1114_v5 = vcombine.high %v6837_v31, %v1064_v60  ;;  %v1105_v6 = vrot.slane %v1097_v61, %v6855_v44 }
  0x53   : > { %v953_v7 = vrot.slane %v945_v53, %v6820_v15  ;;  %v960_v8 = vrot.slane %v946_v54, %v6820_v15  ;;  %v1112_v9 = vrot.slane %v1098_v0, %v6855_v44  ;;  %v1089_v11 = vrot.slane %v1081_v55, %v6820_v15 }
  0x54   : > { %6026 = vmatmul.mubr.msk.f32.gmra.mxu0 %vm318_vm0, %v6825_v18  ;;  %6038 = vmatmul.mubr.msk.f32.gmra.mxu1 %vm318_vm0, %v304_v32  ;;  %v1121_v10 = vrot.slane %v1113_v4, %v6855_v44  ;;  %v1128_v17 = vrot.slane %v1114_v5, %v6855_v44  ;;  %v1096_v18 = vrot.slane %v1082_v1, %v6820_v15 }
  0x55   : > { %6028 = vmatprep.mubr.msk.f32.mxu0 %vm318_vm0, %v297_v36  ;;  %6040 = vmatprep.mubr.msk.f32.mxu1 %vm318_vm0, %v305_v50  ;;  %v993_v12 = vcombine.low %v6843_v33, %v953_v7  ;;  %v994_v13 = vcombine.high %v6843_v33, %v953_v7  ;;  %v1009_v14 = vcombine.low %v944_v38, %v960_v8 }
  0x56   : > { %v1010_v16 = vcombine.high %v944_v38, %v960_v8  ;;  %v1129_v19 = vcombine.low %v1073_v43, %v1089_v11  ;;  %v1130_v20 = vcombine.high %v1073_v43, %v1089_v11  ;;  %v1145_v27 = vcombine.low %v6858_v46, %v1096_v18 }
  0x57   : > { %v1001_v21 = vrot.slane %v993_v12, %v6855_v44  ;;  %v1008_v22 = vrot.slane %v994_v13, %v6855_v44  ;;  %v1017_v23 = vrot.slane %v1009_v14, %v6855_v44  ;;  %v1146_v28 = vcombine.high %v6858_v46, %v1096_v18 }
  0x58   : > { %6029 = vmatmul.mubr.msk.f32.gmra.mxu0 %vm318_vm0, %v298_v41  ;;  %v1024_v24 = vrot.slane %v1010_v16, %v6855_v44  ;;  %6041 = vmatmul.mubr.msk.f32.gmra.mxu1 %vm318_vm0, %v306_v51  ;;  %v1137_v25 = vrot.slane %v1129_v19, %v6855_v44  ;;  %v1144_v26 = vrot.slane %v1130_v20, %v6855_v44 }
  0x59   : > { %v1025_v29 = vcombine.low %v969_v62, %v1001_v21  ;;  %v1026_v30 = vcombine.high %v969_v62, %v1001_v21  ;;  %v1027_v31 = vcombine.low %v976_v63, %v1008_v22  ;;  %v1028_v32 = vcombine.high %v976_v63, %v1008_v22 }
  0x5a   : > { %v1029_v33 = vcombine.low %v985_v2, %v1017_v23  ;;  %v1030_v34 = vcombine.high %v985_v2, %v1017_v23  ;;  %v1031_v35 = vcombine.low %v992_v3, %v1024_v24  ;;  %v1032_v36 = vcombine.high %v992_v3, %v1024_v24 }
  0x5b   : > { %1169 = vst.msk [vmem:[#allocation5] sm:$0xff] %vm318_vm0, %v1025_v29  ;;  %1170 = vst.msk [vmem:[#allocation5 + $0x8] sm:$0xff] %vm318_vm0, %v1026_v30  ;;  %v1153_v37 = vrot.slane %v1145_v27, %v6855_v44  ;;  %v1160_v38 = vrot.slane %v1146_v28, %v6855_v44  ;;  %v1161_v39 = vcombine.low %v1105_v6, %v1137_v25 }
  0x5c   : > { %1171 = vst.msk [vmem:[#allocation5 + $0x10] sm:$0xff] %vm318_vm0, %v1027_v31  ;;  %1172 = vst.msk [vmem:[#allocation5 + $0x18] sm:$0xff] %vm318_vm0, %v1028_v32  ;;  %v1162_v40 = vcombine.high %v1105_v6, %v1137_v25  ;;  %v1163_v41 = vcombine.low %v1112_v9, %v1144_v26  ;;  %v1164_v42 = vcombine.high %v1112_v9, %v1144_v26 }
  0x5d   : > { %1173 = vst.msk [vmem:[#allocation5 + $0x20] sm:$0xff] %vm318_vm0, %v1029_v33  ;;  %1174 = vst.msk [vmem:[#allocation5 + $0x28] sm:$0xff] %vm318_vm0, %v1030_v34  ;;  %v1165_v43 = vcombine.low %v1121_v10, %v1153_v37  ;;  %v1166_v45 = vcombine.high %v1121_v10, %v1153_v37  ;;  %v1167_v46 = vcombine.low %v1128_v17, %v1160_v38 }
  0x5e   : > { %1175 = vst.msk [vmem:[#allocation5 + $0x30] sm:$0xff] %vm318_vm0, %v1031_v35  ;;  %1176 = vst.msk [vmem:[#allocation5 + $0x38] sm:$0xff] %vm318_vm0, %v1032_v36  ;;  %v1168_v47 = vcombine.high %v1128_v17, %v1160_v38 }
  0x5f   : > { %1177 = vst.msk [vmem:[#allocation5 + $0x40] sm:$0xff] %vm318_vm0, %v1161_v39  ;;  %1178 = vst.msk [vmem:[#allocation5 + $0x48] sm:$0xff] %vm318_vm0, %v1162_v40 }
  0x60   : > { %1179 = vst.msk [vmem:[#allocation5 + $0x50] sm:$0xff] %vm318_vm0, %v1163_v41  ;;  %1180 = vst.msk [vmem:[#allocation5 + $0x58] sm:$0xff] %vm318_vm0, %v1164_v42 }
  0x61   : > { %1181 = vst.msk [vmem:[#allocation5 + $0x60] sm:$0xff] %vm318_vm0, %v1165_v43  ;;  %1182 = vst.msk [vmem:[#allocation5 + $0x68] sm:$0xff] %vm318_vm0, %v1166_v45 }
  0x62   : > { %1183 = vst.msk [vmem:[#allocation5 + $0x70] sm:$0xff] %vm318_vm0, %v1167_v46  ;;  %1184 = vst.msk [vmem:[#allocation5 + $0x78] sm:$0xff] %vm318_vm0, %v1168_v47 }
 0x10c   : > { %v6021_v49 = vpop.f32.mrf.mxu0  ;;  %v6033_v50 = vpop.f32.mrf.mxu1 }
 0x10d   : > { %v439_v51 = vadd.f32 %v6021_v49, %v5773_v48  ;;  %v479_v52 = vadd.f32 %v6033_v50, %v5773_v48 }
 0x10e   : > { %v433_v53 = vpop.f32.mrf.mxu0  ;;  %v473_v54 = vpop.f32.mrf.mxu1 }
 0x10f   : > { %514 = vst.msk [vmem:[#allocation2 + $0x8] sm:$0xff] %vm512_vm1, %v439_v51  ;;  %522 = vst.msk [vmem:[#allocation2 + $0x48] sm:$0xff] %vm512_vm1, %v479_v52  ;;  %v434_v55 = vadd.f32 %v5773_v48, %v433_v53  ;;  %v474_v56 = vadd.f32 %v5773_v48, %v473_v54  ;;  %563 = vrot.lane.b32.xlu1 %v479_v52, %s6622_s16  ;;  %547 = vrot.lane.b32.xlu0 %v439_v51, %s6622_s16 }
 0x110   : > { %v6024_v57 = vpop.f32.mrf.mxu0  ;;  %v6036_v58 = vpop.f32.mrf.mxu1 }
 0x111   : > { %513 = vst.msk [vmem:[#allocation2] sm:$0xff] %vm512_vm1, %v434_v55  ;;  %521 = vst.msk [vmem:[#allocation2 + $0x40] sm:$0xff] %vm512_vm1, %v474_v56  ;;  %v449_v59 = vadd.f32 %v6024_v57, %v5773_v48  ;;  %v489_v60 = vadd.f32 %v6036_v58, %v5773_v48 }
 0x112   : > { %v443_v61 = vpop.f32.mrf.mxu0  ;;  %v483_v62 = vpop.f32.mrf.mxu1 }
 0x113   : > { %516 = vst.msk [vmem:[#allocation2 + $0x18] sm:$0xff] %vm512_vm1, %v449_v59  ;;  %v444_v63 = vadd.f32 %v5773_v48, %v443_v61  ;;  %524 = vst.msk [vmem:[#allocation2 + $0x58] sm:$0xff] %vm512_vm1, %v489_v60  ;;  %551 = vrot.lane.b32.xlu1 %v449_v59, %s6622_s16  ;;  %545 = vrot.lane.b32.xlu0 %v434_v55, %s6622_s16  ;;  %v484_v0 = vadd.f32 %v5773_v48, %v483_v62 }
 0x114   : > { %v6027_v1 = vpop.f32.mrf.mxu0  ;;  %v6039_v2 = vpop.f32.mrf.mxu1 }
 0x115   : > { %515 = vst.msk [vmem:[#allocation2 + $0x10] sm:$0xff] %vm512_vm1, %v444_v63  ;;  %523 = vst.msk [vmem:[#allocation2 + $0x50] sm:$0xff] %vm512_vm1, %v484_v0  ;;  %v459_v3 = vadd.f32 %v6027_v1, %v5773_v48  ;;  %v499_v4 = vadd.f32 %v6039_v2, %v5773_v48 }
 0x116   : > { %v453_v5 = vpop.f32.mrf.mxu0  ;;  %v493_v6 = vpop.f32.mrf.mxu1 }
 0x117   : > { %567 = vrot.lane.b32.xlu1 %v489_v60, %s6622_s16  ;;  %561 = vrot.lane.b32.xlu0 %v474_v56, %s6622_s16  ;;  %518 = vst.msk [vmem:[#allocation2 + $0x28] sm:$0xff] %vm512_vm1, %v459_v3  ;;  %v454_v7 = vadd.f32 %v5773_v48, %v453_v5  ;;  %526 = vst.msk [vmem:[#allocation2 + $0x68] sm:$0xff] %vm512_vm1, %v499_v4  ;;  %v494_v8 = vadd.f32 %v5773_v48, %v493_v6 }
 0x118   : > { %v6030_v9 = vpop.f32.mrf.mxu0  ;;  %v6042_v11 = vpop.f32.mrf.mxu1 }
 0x119   : > { %517 = vst.msk [vmem:[#allocation2 + $0x20] sm:$0xff] %vm512_vm1, %v454_v7  ;;  %525 = vst.msk [vmem:[#allocation2 + $0x60] sm:$0xff] %vm512_vm1, %v494_v8  ;;  %v469_v10 = vadd.f32 %v6030_v9, %v5773_v48  ;;  %v509_v13 = vadd.f32 %v6042_v11, %v5773_v48 }
 0x11a   : > { %v463_v12 = vpop.f32.mrf.mxu0  ;;  %v503_v16 = vpop.f32.mrf.mxu1 }
 0x11b   : > { %549 = vrot.lane.b32.xlu1 %v444_v63, %s6622_s16  ;;  %565 = vrot.lane.b32.xlu0 %v484_v0, %s6622_s16  ;;  %520 = vst.msk [vmem:[#allocation2 + $0x38] sm:$0xff] %vm512_vm1, %v469_v10  ;;  %v464_v14 = vadd.f32 %v5773_v48, %v463_v12  ;;  %528 = vst.msk [vmem:[#allocation2 + $0x78] sm:$0xff] %vm512_vm1, %v509_v13  ;;  %v504_v17 = vadd.f32 %v5773_v48, %v503_v16 }
 0x11d   : > { %519 = vst.msk [vmem:[#allocation2 + $0x30] sm:$0xff] %vm512_vm1, %v464_v14  ;;  %527 = vst.msk [vmem:[#allocation2 + $0x70] sm:$0xff] %vm512_vm1, %v504_v17 }
 0x11f   : > { %555 = vrot.lane.b32.xlu1 %v459_v3, %s6622_s16  ;;  %553 = vrot.lane.b32.xlu0 %v454_v7, %s6622_s16 }
 0x123   : > { %571 = vrot.lane.b32.xlu1 %v499_v4, %s6622_s16  ;;  %569 = vrot.lane.b32.xlu0 %v494_v8, %s6622_s16 }
 0x127   : > { %559 = vrot.lane.b32.xlu1 %v469_v10, %s6622_s16  ;;  %557 = vrot.lane.b32.xlu0 %v464_v14, %s6622_s16 }
 0x12b   : > { %575 = vrot.lane.b32.xlu1 %v509_v13, %s6622_s16  ;;  %573 = vrot.lane.b32.xlu0 %v504_v17, %s6622_s16 }
 0x181   : > { %v564_v18 = vpop.permute.xlu1 %563  ;;  %v548_v19 = vpop.permute.xlu0 %547 }
 0x182   : > { %602 = vst.msk [vmem:[#allocation3 + $0x48] sm:$0xff] %vm512_vm1, %v564_v18  ;;  %594 = vst.msk [vmem:[#allocation3 + $0x8] sm:$0xff] %vm512_vm1, %v548_v19 }
 0x185   : > { %v552_v20 = vpop.permute.xlu1 %551  ;;  %v546_v21 = vpop.permute.xlu0 %545 }
 0x186   : > { %596 = vst.msk [vmem:[#allocation3 + $0x18] sm:$0xff] %vm512_vm1, %v552_v20  ;;  %593 = vst.msk [vmem:[#allocation3] sm:$0xff] %vm512_vm1, %v546_v21 }
 0x189   : > { %v6959_v22 = vpop.permute.xlu1 %567  ;;  %v562_v23 = vpop.permute.xlu0 %561 }
 0x18a   : > { %604 = vst.msk [vmem:[#allocation3 + $0x58] sm:$0xff] %vm512_vm1, %v6959_v22  ;;  %601 = vst.msk [vmem:[#allocation3 + $0x40] sm:$0xff] %vm512_vm1, %v562_v23 }
 0x18d   : > { %v550_v24 = vpop.permute.xlu1 %549  ;;  %v6964_v25 = vpop.permute.xlu0 %565 }
 0x18e   : > { %595 = vst.msk [vmem:[#allocation3 + $0x10] sm:$0xff] %vm512_vm1, %v550_v24  ;;  %603 = vst.msk [vmem:[#allocation3 + $0x50] sm:$0xff] %vm512_vm1, %v6964_v25 }
 0x191   : > { %v556_v26 = vpop.permute.xlu1 %555  ;;  %v554_v27 = vpop.permute.xlu0 %553 }
 0x192   : > { %598 = vst.msk [vmem:[#allocation3 + $0x28] sm:$0xff] %vm512_vm1, %v556_v26  ;;  %597 = vst.msk [vmem:[#allocation3 + $0x20] sm:$0xff] %vm512_vm1, %v554_v27  ;;  %v745_v30 = vcombine.low %v548_v19, %v556_v26  ;;  %v746_v31 = vcombine.high %v548_v19, %v556_v26  ;;  %v609_v32 = vcombine.low %v546_v21, %v554_v27 }
 0x193   : > { %v610_v33 = vcombine.high %v546_v21, %v554_v27 }
 0x194   : > { %v753_v47 = vrot.slane %v745_v30, %v6820_v15  ;;  %v760_v48 = vrot.slane %v746_v31, %v6820_v15  ;;  %v617_v53 = vrot.slane %v609_v32, %v6820_v15 }
 0x195   : > { %v572_v28 = vpop.permute.xlu1 %571  ;;  %v570_v29 = vpop.permute.xlu0 %569  ;;  %v624_v54 = vrot.slane %v610_v33, %v6820_v15 }
 0x196   : > { %606 = vst.msk [vmem:[#allocation3 + $0x68] sm:$0xff] %vm512_vm1, %v572_v28  ;;  %605 = vst.msk [vmem:[#allocation3 + $0x60] sm:$0xff] %vm512_vm1, %v570_v29  ;;  %v777_v40 = vcombine.low %v564_v18, %v572_v28  ;;  %v778_v41 = vcombine.high %v564_v18, %v572_v28  ;;  %v641_v42 = vcombine.low %v562_v23, %v570_v29 }
 0x197   : > { %v642_v43 = vcombine.high %v562_v23, %v570_v29 }
 0x198   : > { %v785_v59 = vrot.slane %v777_v40, %v6820_v15  ;;  %v792_v60 = vrot.slane %v778_v41, %v6820_v15  ;;  %v649_v61 = vrot.slane %v641_v42, %v6820_v15 }
 0x199   : > { %v560_v34 = vpop.permute.xlu1 %559  ;;  %v558_v35 = vpop.permute.xlu0 %557  ;;  %v656_v62 = vrot.slane %v642_v43, %v6820_v15 }
 0x19a   : > { %600 = vst.msk [vmem:[#allocation3 + $0x38] sm:$0xff] %vm512_vm1, %v560_v34  ;;  %v761_v36 = vcombine.low %v552_v20, %v560_v34  ;;  %v762_v37 = vcombine.high %v552_v20, %v560_v34  ;;  %599 = vst.msk [vmem:[#allocation3 + $0x30] sm:$0xff] %vm512_vm1, %v558_v35  ;;  %v625_v38 = vcombine.low %v550_v24, %v558_v35 }
 0x19b   : > { %v626_v39 = vcombine.high %v550_v24, %v558_v35 }
 0x19c   : > { %v769_v45 = vrot.slane %v761_v36, %v6820_v15  ;;  %v776_v46 = vrot.slane %v762_v37, %v6820_v15  ;;  %v633_v49 = vrot.slane %v625_v38, %v6820_v15 }
 0x19d   : > { %v640_v50 = vrot.slane %v626_v39, %v6820_v15  ;;  %v576_v51 = vpop.permute.xlu1 %575  ;;  %v574_v52 = vpop.permute.xlu0 %573 }
 0x19e   : > { %608 = vst.msk [vmem:[#allocation3 + $0x78] sm:$0xff] %vm512_vm1, %v576_v51  ;;  %607 = vst.msk [vmem:[#allocation3 + $0x70] sm:$0xff] %vm512_vm1, %v574_v52  ;;  %v809_v55 = vcombine.low %v753_v47, %v769_v45  ;;  %v810_v56 = vcombine.high %v753_v47, %v769_v45  ;;  %v825_v57 = vcombine.low %v760_v48, %v776_v46 }
 0x19f   : > { %v826_v58 = vcombine.high %v760_v48, %v776_v46  ;;  %v673_v63 = vcombine.low %v617_v53, %v633_v49  ;;  %v674_v0 = vcombine.high %v617_v53, %v633_v49  ;;  %v689_v1 = vcombine.low %v624_v54, %v640_v50 }
 0x1a0   : > { %v690_v2 = vcombine.high %v624_v54, %v640_v50  ;;  %v793_v3 = vcombine.low %v6959_v22, %v576_v51  ;;  %v794_v4 = vcombine.high %v6959_v22, %v576_v51  ;;  %v657_v5 = vcombine.low %v6964_v25, %v574_v52 }
 0x1a1   : > { %v658_v6 = vcombine.high %v6964_v25, %v574_v52  ;;  %v817_v7 = vrot.slane %v809_v55, %v6855_v44  ;;  %v824_v8 = vrot.slane %v810_v56, %v6855_v44  ;;  %v833_v9 = vrot.slane %v825_v57, %v6855_v44 }
 0x1a2   : > { %v840_v10 = vrot.slane %v826_v58, %v6855_v44  ;;  %v801_v11 = vrot.slane %v793_v3, %v6820_v15  ;;  %v808_v12 = vrot.slane %v794_v4, %v6820_v15  ;;  %v665_v13 = vrot.slane %v657_v5, %v6820_v15 }
 0x1a3   : > { %v672_v14 = vrot.slane %v658_v6, %v6820_v15  ;;  %v681_v16 = vrot.slane %v673_v63, %v6855_v44  ;;  %v688_v17 = vrot.slane %v674_v0, %v6855_v44  ;;  %v697_v18 = vrot.slane %v689_v1, %v6855_v44 }
 0x1a4   : > { %v704_v19 = vrot.slane %v690_v2, %v6855_v44  ;;  %v841_v20 = vcombine.low %v785_v59, %v801_v11  ;;  %v842_v21 = vcombine.high %v785_v59, %v801_v11  ;;  %v857_v22 = vcombine.low %v792_v60, %v808_v12 }
 0x1a5   : > { %v858_v23 = vcombine.high %v792_v60, %v808_v12  ;;  %v705_v24 = vcombine.low %v649_v61, %v665_v13  ;;  %v706_v25 = vcombine.high %v649_v61, %v665_v13  ;;  %v721_v26 = vcombine.low %v656_v62, %v672_v14 }
 0x1a6   : > { %v722_v27 = vcombine.high %v656_v62, %v672_v14  ;;  %v849_v28 = vrot.slane %v841_v20, %v6855_v44  ;;  %v856_v15 = vrot.slane %v842_v21, %v6855_v44  ;;  %v865_v29 = vrot.slane %v857_v22, %v6855_v44 }
 0x1a7   : > { %v872_v30 = vrot.slane %v858_v23, %v6855_v44  ;;  %v713_v31 = vrot.slane %v705_v24, %v6855_v44  ;;  %v720_v32 = vrot.slane %v706_v25, %v6855_v44  ;;  %v729_v33 = vrot.slane %v721_v26, %v6855_v44 }
 0x1a8   : > { %v736_v34 = vrot.slane %v722_v27, %v6855_v44  ;;  %v873_v35 = vcombine.low %v817_v7, %v849_v28  ;;  %v874_v36 = vcombine.high %v817_v7, %v849_v28  ;;  %v875_v37 = vcombine.low %v824_v8, %v856_v15 }
 0x1a9   : > { %v876_v38 = vcombine.high %v824_v8, %v856_v15  ;;  %v877_v39 = vcombine.low %v833_v9, %v865_v29  ;;  %v878_v40 = vcombine.high %v833_v9, %v865_v29  ;;  %v879_v41 = vcombine.low %v840_v10, %v872_v30 }
 0x1aa   : > { %v880_v42 = vcombine.high %v840_v10, %v872_v30  ;;  %889 = vst.msk [vmem:[#allocation4 + $0x40] sm:$0xff] %vm512_vm1, %v873_v35  ;;  %890 = vst.msk [vmem:[#allocation4 + $0x48] sm:$0xff] %vm512_vm1, %v874_v36  ;;  %v737_v43 = vcombine.low %v681_v16, %v713_v31  ;;  %v738_v45 = vcombine.high %v681_v16, %v713_v31 }
 0x1ab   : > { %891 = vst.msk [vmem:[#allocation4 + $0x50] sm:$0xff] %vm512_vm1, %v875_v37  ;;  %892 = vst.msk [vmem:[#allocation4 + $0x58] sm:$0xff] %vm512_vm1, %v876_v38  ;;  %v739_v46 = vcombine.low %v688_v17, %v720_v32  ;;  %v740_v44 = vcombine.high %v688_v17, %v720_v32  ;;  %v741_v47 = vcombine.low %v697_v18, %v729_v33 }
 0x1ac   : > { %893 = vst.msk [vmem:[#allocation4 + $0x60] sm:$0xff] %vm512_vm1, %v877_v39  ;;  %894 = vst.msk [vmem:[#allocation4 + $0x68] sm:$0xff] %vm512_vm1, %v878_v40  ;;  %v742_v48 = vcombine.high %v697_v18, %v729_v33  ;;  %v743_v49 = vcombine.low %v704_v19, %v736_v34  ;;  %v744_v50 = vcombine.high %v704_v19, %v736_v34 }
 0x1ad   : > { %895 = vst.msk [vmem:[#allocation4 + $0x70] sm:$0xff] %vm512_vm1, %v879_v41  ;;  %896 = vst.msk [vmem:[#allocation4 + $0x78] sm:$0xff] %vm512_vm1, %v880_v42 }
 0x1ae   : > { %881 = vst.msk [vmem:[#allocation4] sm:$0xff] %vm512_vm1, %v737_v43  ;;  %882 = vst.msk [vmem:[#allocation4 + $0x8] sm:$0xff] %vm512_vm1, %v738_v45 }
 0x1af   : > { %883 = vst.msk [vmem:[#allocation4 + $0x10] sm:$0xff] %vm512_vm1, %v739_v46  ;;  %884 = vst.msk [vmem:[#allocation4 + $0x18] sm:$0xff] %vm512_vm1, %v740_v44 }
 0x1b0   : > { %885 = vst.msk [vmem:[#allocation4 + $0x20] sm:$0xff] %vm512_vm1, %v741_v47  ;;  %886 = vst.msk [vmem:[#allocation4 + $0x28] sm:$0xff] %vm512_vm1, %v742_v48 }
 0x1b1   : > { %887 = vst.msk [vmem:[#allocation4 + $0x30] sm:$0xff] %vm512_vm1, %v743_v49  ;;  %888 = vst.msk [vmem:[#allocation4 + $0x38] sm:$0xff] %vm512_vm1, %v744_v50 }
 0x1b2 PF: > { %s7030_s12 = sshll.u32 %s6599_s29, 6  ;;  %vm1214_vm2 = vcmask 31744   ;;  %v1568_v51 = vlaneseq  ;;  %v6623_v52 = vmov 1983009808   ;;  %v6624_v54 = vmov 1934713408  }
 0x1b3   : > { %v1566_v53 = vunpack.c.l.s4 %v6623_v52  ;;  %v1598_v55 = vunpack.c.l.s4 %v6624_v54  ;;  %s7033_s15 = scalar_lea.vmem [#allocation3], %s7030_s12  ;;  %s7045_s5 = scalar_lea.vmem [#allocation2], %s7030_s12  ;;  %v6625_v14 = vmov 0.0   ;;  %vm6626_vm3 = vmmov 0   ;;  %v1707_v43 = vld [vmem:[#allocation4 + $0x40] sm:$0xff]  ;;  %v1709_v50 = vld [vmem:[#allocation4 + $0x50] sm:$0xff] }
 0x1b4   : > { %v1198_v56 = vld [vmem:[%s7033_s15 + $0x8] sm:$0xff]  ;;  %v1197_v58 = vld [vmem:[%s7033_s15] sm:$0xff]  ;;  %v7039_v59 = vshrl.u32 %v1568_v51, 7  ;;  %v1190_v62 = vld [vmem:[%s7045_s5 + $0x10] sm:$0xff]  ;;  %s5790_s17 = sshll.u32 %s6599_s29, 2  ;;  %vm2981_vm5 = vcmask 60416   ;;  %s7539_s14 = scalar_lea.vmem %s6788_s19, %s7030_s12 [#allocation7] }
 0x1b5   : > { %v1202_v57 = vld [vmem:[%s7033_s15 + $0x28] sm:$0xff]  ;;  %6043 = vmatprep.subr.msk.mxu1 %vm1214_vm2, %v1198_v56  ;;  %v1201_v60 = vld [vmem:[%s7033_s15 + $0x20] sm:$0xff]  ;;  %v1567_v63 = vunpack.c.0.s8 %v1566_v53  ;;  %v7053_v1 = vld [vmem:[%s7045_s5 + $0x30] sm:$0xff]  ;;  %v1599_v2 = vunpack.c.0.s8 %v1598_v55  ;;  %vm2956_vm6 = vcmask 130048   ;;  %vm3110_vm7 = vcmask 1041409   ;;  %s7865_s18 = sld [smem:[#allocation17_spill]] }
 0x1b6   : > { %6057 = vmatprep.subr.msk.mxu0 %vm1214_vm2, %v1202_v57  ;;  %v1188_v61 = vld [vmem:[%s7045_s5] sm:$0xff]  ;;  %6044 = vmatpush3.xpose.msk.msra.mxu1 %vm1214_vm2, %v1198_v56  ;;  %v1579_v5 = vcombine.low %v1190_v62, %v7053_v1  ;;  %v1200_v6 = vld [vmem:[%s7033_s15 + $0x18] sm:$0xff]  ;;  %v1580_v9 = vcombine.high %v1190_v62, %v7053_v1  ;;  %v7073_v12 = vld [vmem:[%s7045_s5 + $0x8] sm:$0xff]  ;;  %vm3112_vm8 = vcmask 1042434   ;;  %vm3114_vm9 = vcmask 1043459   ;;  %s7781_s16 = scalar_lea.sflag [#allocation9], %s282_s13 }
 0x1b7   : > { %6058 = vmatpush3.xpose.msk.msra.mxu0 %vm1214_vm2, %v1202_v57  ;;  %v1192_v0 = vld [vmem:[%s7045_s5 + $0x20] sm:$0xff]  ;;  %6045 = vmatprep.subr.msk.mxu1 %vm1214_vm2, %v1197_v58  ;;  %v7058_v4 = vsub.s32 %v1567_v63, %v7039_v59  ;;  %v7070_v11 = vsub.s32 %v1599_v2, %v7039_v59  ;;  %v7076_v13 = vld [vmem:[%s7045_s5 + $0x28] sm:$0xff]  ;;  %v1199_v18 = vld [vmem:[%s7033_s15 + $0x10] sm:$0xff]  ;;  %vm3116_vm10 = vcmask 1044484   ;;  %vm3118_vm11 = vcmask 1045509  }
 0x1b8   : > { %6059 = vmatprep.subr.msk.mxu0 %vm1214_vm2, %v1201_v60  ;;  %v1563_v3 = vcombine.low %v1188_v61, %v1192_v0  ;;  %6047 = vmatprep.mubr.msk.f32.mxu1 %vm1214_vm2, %v1188_v61  ;;  %v1564_v7 = vcombine.high %v1188_v61, %v1192_v0  ;;  %v1699_v17 = vld [vmem:[#allocation4] sm:$0xff]  ;;  %v1701_v23 = vld [vmem:[#allocation4 + $0x10] sm:$0xff]  ;;  %v1195_v24 = vld [vmem:[%s7045_s5 + $0x38] sm:$0xff]  ;;  %v1631_v15 = vcombine.low %v7073_v12, %v7076_v13  ;;  %vm3120_vm12 = vcmask 1046534  }
 0x1b9   : > { %6061 = vmatprep.mubr.msk.f32.mxu0 %vm1214_vm2, %v1192_v0  ;;  %v1587_v10 = vrot.slane %v1579_v5, %v7058_v4  ;;  %v1594_v20 = vrot.slane %v1580_v9, %v7058_v4  ;;  %v1204_v25 = vld [vmem:[%s7033_s15 + $0x38] sm:$0xff]  ;;  %v1703_v30 = vld [vmem:[#allocation4 + $0x20] sm:$0xff]  ;;  %v1203_v31 = vld [vmem:[%s7033_s15 + $0x30] sm:$0xff]  ;;  %v1632_v38 = vcombine.high %v7073_v12, %v7076_v13  ;;  %v2933_v9 = vstv %s5790_s17  ;;  %s6628_s15 = smov [#allocation10]  }
 0x1ba   : > { %v1571_v8 = vrot.slane %v1563_v3, %v7058_v4  ;;  %6046 = vmatpush3.xpose.msk.msra.mxu1 %vm1214_vm2, %v1197_v58  ;;  %v1578_v19 = vrot.slane %v1564_v7, %v7058_v4  ;;  %v1191_v28 = vld [vmem:[%s7045_s5 + $0x18] sm:$0xff]  ;;  %v1639_v34 = vrot.slane %v1631_v15, %v7058_v4  ;;  %v1705_v36 = vld [vmem:[#allocation4 + $0x30] sm:$0xff]  ;;  %v1700_v41 = vld [vmem:[#allocation4 + $0x8] sm:$0xff]  ;;  %vm3122_vm13 = vcmask 1047559   ;;  %s6499_s5 = sshll.u32 %s6628_s15, 4  ;;  %s6500_s5 = int_to_ptr.vmem [resolvable:$false] %s6499_s5 }
 0x1bb   : > { %6060 = vmatpush3.xpose.msk.msra.mxu0 %vm1214_vm2, %v1201_v60  ;;  %6050 = vmatprep.subr.msk.mxu1 %vm1214_vm2, %v1200_v6  ;;  %v1647_v29 = vcombine.low %v1191_v28, %v1195_v24  ;;  %v1648_v39 = vcombine.high %v1191_v28, %v1195_v24  ;;  %v1646_v45 = vrot.slane %v1632_v38, %v7058_v4  ;;  %v1702_v47 = vld [vmem:[#allocation4 + $0x18] sm:$0xff]  ;;  %v1704_v53 = vld [vmem:[#allocation4 + $0x28] sm:$0xff]  ;;  %v1711_v56 = vld [vmem:[#allocation4 + $0x60] sm:$0xff]  ;;  %vm3299_vm14 = vcmask 130112   ;;  %s6501_s17 = scalar_lea.vmem %s6500_s5, 2048 }
 0x1bc   : > { %6071 = vmatprep.subr.mxu0 %v6625_v14  ;;  %v1595_v16 = vcombine.low %v1571_v8, %v1587_v10  ;;  %v1596_v21 = vcombine.high %v1571_v8, %v1587_v10  ;;  %v1611_v27 = vcombine.low %v1578_v19, %v1594_v20  ;;  %v1612_v32 = vcombine.high %v1578_v19, %v1594_v20  ;;  %v1706_v58 = vld [vmem:[#allocation4 + $0x38] sm:$0xff]  ;;  %v1708_v63 = vld [vmem:[#allocation4 + $0x48] sm:$0xff] }
 0x1bd   : > { %6048 = vmatmul.mubr.msk.f32.vlgmr.msra.gmra.mxu1 %vm1214_vm2, %v7073_v12  ;;  %v1655_v35 = vrot.slane %v1647_v29, %v7058_v4  ;;  %v1662_v46 = vrot.slane %v1648_v39, %v7058_v4  ;;  %v1710_v2 = vld [vmem:[#allocation4 + $0x58] sm:$0xff]  ;;  %v1712_v5 = vld [vmem:[#allocation4 + $0x68] sm:$0xff]  ;;  %v2934_v10 = vadd.s32 %v2933_v9, %v7039_v59  ;;  %v7215_v12 = vand.u32 127, %v1568_v51 }
 0x1be   : > { %6062 = vmatmul.mubr.msk.f32.vlgmr.msra.gmra.mxu0 %vm1214_vm2, %v7076_v13  ;;  %v1603_v22 = vrot.slane %v1595_v16, %v7070_v11  ;;  %6051 = vmatpush3.xpose.msk.msra.mxu1 %vm1214_vm2, %v1200_v6  ;;  %v1610_v26 = vrot.slane %v1596_v21, %v7070_v11  ;;  %v1619_v33 = vrot.slane %v1611_v27, %v7070_v11  ;;  %v1714_v7 = vld [vmem:[#allocation4 + $0x78] sm:$0xff]  ;;  %vm3809_vm15 = vcmask 64512  }
 0x1bf   : > { %6072 = vmatpush3.xpose.msk.msra.mxu0 %vm1214_vm2, %v1699_v17  ;;  %6073 = vmatprep.mubr.msk.f32.mxu0 %vm6626_vm3, %v6625_v14  ;;  %v1626_v37 = vrot.slane %v1612_v32, %v7070_v11  ;;  %v1663_v40 = vcombine.low %v1639_v34, %v1655_v35  ;;  %v1664_v44 = vcombine.high %v1639_v34, %v1655_v35  ;;  %vm5497_vm0 = vcmask 261120  }
 0x1c0   : > { %6052 = vmatprep.subr.msk.mxu1 %vm1214_vm2, %v1199_v18  ;;  %6081 = vmatprep.subr.mxu0 %v6625_v14  ;;  %v1627_v42 = vcombine.high %v1603_v22, %v6625_v14  ;;  %v1628_v49 = vcombine.high %v1610_v26, %v6625_v14  ;;  %v1679_v52 = vcombine.low %v1646_v45, %v1662_v46 }
 0x1c1   : > { %6054 = vmatprep.mubr.msk.f32.mxu1 %vm1214_vm2, %v1190_v62  ;;  %v1671_v48 = vrot.slane %v1663_v40, %v7070_v11  ;;  %v1678_v54 = vrot.slane %v1664_v44, %v7070_v11  ;;  %v1629_v55 = vcombine.high %v1619_v33, %v6625_v14  ;;  %v1680_v57 = vcombine.high %v1646_v45, %v1662_v46  ;;  %v1713_v62 = vld [vmem:[#allocation4 + $0x70] sm:$0xff] }
 0x1c2   : > { %6074 = vmatmul.mubr.msk.f32.vlgmr.msra.gmra.mxu0 %vm1214_vm2, %v1603_v22  ;;  %6053 = vmatpush3.xpose.msk.msra.mxu1 %vm1214_vm2, %v1199_v18  ;;  %v1687_v60 = vrot.slane %v1679_v52, %v7070_v11  ;;  %v1630_v61 = vcombine.high %v1626_v37, %v6625_v14  ;;  %vm7222_vm4 = vcmp.eq.s32.totalorder %v2934_v10, %v7215_v12 }
 0x1c3   : > { %6082 = vmatpush3.xpose.msk.msra.mxu0 %vm1214_vm2, %v1701_v23  ;;  %6083 = vmatprep.mubr.msk.f32.mxu0 %vm6626_vm3, %v6625_v14  ;;  %v1694_v0 = vrot.slane %v1680_v57, %v7070_v11  ;;  %v1696_v3 = vcombine.high %v1678_v54, %v6625_v14 }
 0x1c4   : > { %6064 = vmatprep.subr.msk.mxu1 %vm1214_vm2, %v1204_v25  ;;  %6091 = vmatprep.subr.mxu0 %v6625_v14  ;;  %v1697_v6 = vcombine.high %v1687_v60, %v6625_v14 }
 0x1c5   : > { %6055 = vmatmul.mubr.msk.f32.vlgmr.msra.gmra.mxu1 %vm1214_vm2, %v1191_v28  ;;  %v1698_v8 = vcombine.high %v1694_v0, %v6625_v14 }
 0x1c6   : > { %6084 = vmatmul.mubr.msk.f32.vlgmr.msra.gmra.mxu0 %vm1214_vm2, %v1610_v26  ;;  %6065 = vmatpush3.xpose.msk.msra.mxu1 %vm1214_vm2, %v1204_v25 }
 0x1c7   : > { %6092 = vmatpush3.xpose.msk.msra.mxu0 %vm1214_vm2, %v1703_v30  ;;  %6093 = vmatprep.mubr.msk.f32.mxu0 %vm6626_vm3, %v6625_v14 }
 0x1c8   : > { %6066 = vmatprep.subr.msk.mxu1 %vm1214_vm2, %v1203_v31  ;;  %6101 = vmatprep.subr.mxu0 %v6625_v14 }
 0x1c9   : > { %6068 = vmatprep.mubr.msk.f32.mxu1 %vm1214_vm2, %v7053_v1  ;;  %v1695_v1 = vcombine.high %v1671_v48, %v6625_v14 }
 0x1ca   : > { %6094 = vmatmul.mubr.msk.f32.vlgmr.msra.gmra.mxu0 %vm1214_vm2, %v1619_v33  ;;  %6067 = vmatpush3.xpose.msk.msra.mxu1 %vm1214_vm2, %v1203_v31 }
 0x1cb   : > { %6102 = vmatpush3.xpose.msk.msra.mxu0 %vm1214_vm2, %v1705_v36  ;;  %6103 = vmatprep.mubr.msk.f32.mxu0 %vm6626_vm3, %v6625_v14 }
 0x1cc   : > { %6076 = vmatprep.subr.mxu1 %v6625_v14  ;;  %6111 = vmatprep.subr.mxu0 %v6625_v14 }
 0x1cd   : > { %6069 = vmatmul.mubr.msk.f32.vlgmr.msra.gmra.mxu1 %vm1214_vm2, %v1195_v24 }
 0x1ce   : > { %6104 = vmatmul.mubr.msk.f32.vlgmr.msra.gmra.mxu0 %vm1214_vm2, %v1626_v37  ;;  %6077 = vmatpush3.xpose.msk.msra.mxu1 %vm1214_vm2, %v1700_v41 }
 0x1cf   : > { %6078 = vmatprep.mubr.msk.f32.mxu1 %vm6626_vm3, %v6625_v14  ;;  %6086 = vmatprep.subr.mxu1 %v6625_v14 }
 0x1d0   : > { %6112 = vmatpush3.xpose.msk.msra.mxu0 %vm1214_vm2, %v1707_v43  ;;  %6113 = vmatprep.mubr.msk.f32.mxu0 %vm6626_vm3, %v6625_v14 }
 0x1d1   : > { %6079 = vmatmul.mubr.msk.f32.vlgmr.msra.gmra.mxu1 %vm1214_vm2, %v1627_v42  ;;  %6121 = vmatprep.subr.mxu0 %v6625_v14 }
 0x1d2   : > { %6087 = vmatpush3.xpose.msk.msra.mxu1 %vm1214_vm2, %v1702_v47  ;;  %6088 = vmatprep.mubr.msk.f32.mxu1 %vm6626_vm3, %v6625_v14 }
 0x1d3   : > { %6114 = vmatmul.mubr.msk.f32.vlgmr.msra.gmra.mxu0 %vm1214_vm2, %v1671_v48  ;;  %6096 = vmatprep.subr.mxu1 %v6625_v14 }
 0x1d4   : > { %6122 = vmatpush3.xpose.msk.msra.mxu0 %vm1214_vm2, %v1709_v50  ;;  %6123 = vmatprep.mubr.msk.f32.mxu0 %vm6626_vm3, %v6625_v14 }
 0x1d5   : > { %6089 = vmatmul.mubr.msk.f32.vlgmr.msra.gmra.mxu1 %vm1214_vm2, %v1628_v49  ;;  %6131 = vmatprep.subr.mxu0 %v6625_v14 }
 0x1d6   : > { %6097 = vmatpush3.xpose.msk.msra.mxu1 %vm1214_vm2, %v1704_v53  ;;  %6098 = vmatprep.mubr.msk.f32.mxu1 %vm6626_vm3, %v6625_v14 }
 0x1d7   : > { %6124 = vmatmul.mubr.msk.f32.vlgmr.msra.gmra.mxu0 %vm1214_vm2, %v1678_v54  ;;  %6106 = vmatprep.subr.mxu1 %v6625_v14 }
 0x1d8   : > { %6132 = vmatpush3.xpose.msk.msra.mxu0 %vm1214_vm2, %v1711_v56  ;;  %6133 = vmatprep.mubr.msk.f32.mxu0 %vm6626_vm3, %v6625_v14 }
 0x1d9   : > { %6099 = vmatmul.mubr.msk.f32.vlgmr.msra.gmra.mxu1 %vm1214_vm2, %v1629_v55  ;;  %6141 = vmatprep.subr.mxu0 %v6625_v14 }
 0x1da   : > { %6107 = vmatpush3.xpose.msk.msra.mxu1 %vm1214_vm2, %v1706_v58  ;;  %6108 = vmatprep.mubr.msk.f32.mxu1 %vm6626_vm3, %v6625_v14 }
 0x1db   : > { %6134 = vmatmul.mubr.msk.f32.vlgmr.msra.gmra.mxu0 %vm1214_vm2, %v1687_v60  ;;  %6116 = vmatprep.subr.mxu1 %v6625_v14 }
 0x1dc   : > { %6142 = vmatpush3.xpose.msk.msra.mxu0 %vm1214_vm2, %v1713_v62  ;;  %6143 = vmatprep.mubr.msk.f32.mxu0 %vm6626_vm3, %v6625_v14 }
 0x1dd   : > { %6109 = vmatmul.mubr.msk.f32.vlgmr.msra.gmra.mxu1 %vm1214_vm2, %v1630_v61  ;;  %6151 = vmatprep.subr.mxu0 %v6625_v14 }
 0x1de   : > { %6117 = vmatpush3.xpose.msk.msra.mxu1 %vm1214_vm2, %v1708_v63  ;;  %6118 = vmatprep.mubr.msk.f32.mxu1 %vm6626_vm3, %v6625_v14 }
 0x1df   : > { %6126 = vmatprep.subr.mxu1 %v6625_v14  ;;  %6144 = vmatmul.mubr.msk.f32.vlgmr.msra.gmra.mxu0 %vm1214_vm2, %v1694_v0 }
 0x1e0   : > { %6153 = vmatprep.mubr.msk.f32.mxu0 %vm6626_vm3, %v6625_v14 }
 0x1e1   : > { %6119 = vmatmul.mubr.msk.f32.vlgmr.msra.gmra.mxu1 %vm1214_vm2, %v1695_v1 }
 0x1e2   : > { %6127 = vmatpush3.xpose.msk.msra.mxu1 %vm1214_vm2, %v1710_v2  ;;  %6128 = vmatprep.mubr.msk.f32.mxu1 %vm6626_vm3, %v6625_v14 }
 0x1e3   : > { %6136 = vmatprep.subr.mxu1 %v6625_v14 }
 0x1e5   : > { %6129 = vmatmul.mubr.msk.f32.vlgmr.msra.gmra.mxu1 %vm1214_vm2, %v1696_v3 }
 0x1e6   : > { %6137 = vmatpush3.xpose.msk.msra.mxu1 %vm1214_vm2, %v1712_v5  ;;  %6138 = vmatprep.mubr.msk.f32.mxu1 %vm6626_vm3, %v6625_v14 }
 0x1e7   : > { %6146 = vmatprep.subr.mxu1 %v6625_v14 }
 0x1e9   : > { %6139 = vmatmul.mubr.msk.f32.vlgmr.msra.gmra.mxu1 %vm1214_vm2, %v1697_v6 }
 0x1ea   : > { %6147 = vmatpush3.xpose.msk.msra.mxu1 %vm1214_vm2, %v1714_v7  ;;  %6148 = vmatprep.mubr.msk.f32.mxu1 %vm6626_vm3, %v6625_v14 }
 0x1eb   : > { %6156 = vmatprep.subr.mxu1 %v6625_v14 }
 0x1ed   : > { %6149 = vmatmul.mubr.msk.f32.vlgmr.msra.gmra.mxu1 %vm1214_vm2, %v1698_v8 }
 0x1ee   : > { %6158 = vmatprep.mubr.msk.f32.mxu1 %vm6626_vm3, %v6625_v14 }
 0x27d   : > { %v7226_v18 = vpop.f32.mrf.mxu1 }
 0x27e   : > { %v7217_v13 = vpop.f32.mrf.mxu0 }
 0x27f   : > { %v7234_v22 = vpop.f32.mrf.mxu1 }
 0x280   : > { %v7219_v16 = vpop.f32.mrf.mxu0 }
 0x282   : > { %v1787_v19 = vpop.f32.mrf.mxu0 }
 0x283   : > { %v7230_v20 = vsel %vm7222_vm4, -1e+30, %v1787_v19 }
 0x284   : > { %v6075_v21 = vpop.f32.mrf.mxu0  ;;  %v2982_v51 = vsel %vm2981_vm5, %v7230_v20, -inf }
 0x285   : > { %2983 = vmax.xlane.f32.xlu0 %v2982_v51  ;;  %v7236_v24 = vpop.f32.mrf.mxu1 }
 0x286   : > { %v1939_v23 = vpop.f32.mrf.mxu0  ;;  %v2966_v17 = vsel %vm2956_vm6, %v7236_v24, -inf }
 0x287   : > { %v7240_v25 = vsel %vm7222_vm4, -1e+30, %v1939_v23  ;;  %v7244_v15 = vpop.f32.mrf.mxu1 }
 0x288   : > { %v6085_v26 = vpop.f32.mrf.mxu0  ;;  %v2988_v27 = vsel %vm2981_vm5, %v7240_v25, -inf }
 0x289   : > { %2989 = vmax.xlane.f32.xlu1 %v2988_v27 }
 0x28a   : > { %v2091_v28 = vpop.f32.mrf.mxu0 }
 0x28b   : > { %v7248_v29 = vsel %vm7222_vm4, -1e+30, %v2091_v28 }
 0x28c   : > { %v6095_v30 = vpop.f32.mrf.mxu0  ;;  %v2994_v31 = vsel %vm2981_vm5, %v7248_v29, -inf }
 0x28d   : > { %2995 = vmax.xlane.f32.xlu0 %v2994_v31  ;;  %v7252_v32 = vpop.f32.mrf.mxu1 }
 0x28e   : > { %v2243_v33 = vpop.f32.mrf.mxu0 }
 0x28f   : > { %v7256_v34 = vsel %vm7222_vm4, -1e+30, %v2243_v33  ;;  %v7258_v35 = vpop.f32.mrf.mxu1 }
 0x290   : > { %v3000_v36 = vsel %vm2981_vm5, %v7256_v34, -inf  ;;  %v6105_v37 = vpop.f32.mrf.mxu0 }
 0x291   : > { %3001 = vmax.xlane.f32.xlu0 %v3000_v36  ;;  %v1863_v38 = vpop.f32.mrf.mxu1 }
 0x292   : > { %v7264_v39 = vsel %vm7222_vm4, -1e+30, %v1863_v38 }
 0x293   : > { %v6080_v40 = vpop.f32.mrf.mxu1  ;;  %v2395_v41 = vpop.f32.mrf.mxu0  ;;  %v2985_v42 = vsel %vm2981_vm5, %v7264_v39, -inf }
 0x294   : > { %v7270_v43 = vsel %vm7222_vm4, -1e+30, %v2395_v41  ;;  %v2957_v41 = vsel %vm2956_vm6, %v7234_v22, -inf }
 0x295   : > { %2986 = vmax.xlane.f32.xlu0 %v2985_v42  ;;  %v2015_v45 = vpop.f32.mrf.mxu1  ;;  %v6115_v46 = vpop.f32.mrf.mxu0  ;;  %v3006_v47 = vsel %vm2981_vm5, %v7270_v43, -inf  ;;  %v2960_v42 = vsel %vm2956_vm6, %v7226_v18, -inf }
 0x296   : > { %v7274_v44 = vsel %vm7222_vm4, -1e+30, %v2015_v45  ;;  %v2963_v45 = vsel %vm2956_vm6, %v7244_v15, -inf  ;;  %v2969_v46 = vsel %vm2956_vm6, %v7219_v16, -inf }
 0x297   : > { %v6090_v48 = vpop.f32.mrf.mxu1  ;;  %v2547_v49 = vpop.f32.mrf.mxu0  ;;  %v2991_v50 = vsel %vm2981_vm5, %v7274_v44, -inf }
 0x298   : > { %v7282_v52 = vsel %vm7222_vm4, -1e+30, %v2547_v49  ;;  %2992 = vmax.xlane.f32.xlu1 %v2991_v50  ;;  %v2975_v48 = vsel %vm2956_vm6, %v7258_v35, -inf  ;;  %v2978_v49 = vsel %vm2956_vm6, %v7252_v32, -inf }
 0x299   : > { %3007 = vmax.xlane.f32.xlu0 %v3006_v47  ;;  %v2167_v53 = vpop.f32.mrf.mxu1  ;;  %v6125_v54 = vpop.f32.mrf.mxu0  ;;  %v3012_v55 = vsel %vm2981_vm5, %v7282_v52, -inf  ;;  %v2972_v47 = vsel %vm2956_vm6, %v7217_v13, -inf }
 0x29a   : > { %v7288_v56 = vsel %vm7222_vm4, -1e+30, %v2167_v53 }
 0x29b   : > { %v6100_v57 = vpop.f32.mrf.mxu1  ;;  %v2699_v58 = vpop.f32.mrf.mxu0  ;;  %v2997_v60 = vsel %vm2981_vm5, %v7288_v56, -inf }
 0x29c   : > { %v7294_v61 = vsel %vm7222_vm4, -1e+30, %v2699_v58  ;;  %3013 = vmax.xlane.f32.xlu1 %v3012_v55  ;;  %v7352_v55 = vsub.s32 %v7215_v12, %v7039_v59 }
 0x29d   : > { %2998 = vmax.xlane.f32.xlu0 %v2997_v60  ;;  %v2319_v62 = vpop.f32.mrf.mxu1  ;;  %v6135_v63 = vpop.f32.mrf.mxu0  ;;  %v3018_v0 = vsel %vm2981_vm5, %v7294_v61, -inf }
 0x29e   : > { %v7300_v1 = vsel %vm7222_vm4, -1e+30, %v2319_v62 }
 0x29f   : > { %v6110_v2 = vpop.f32.mrf.mxu1  ;;  %v3003_v3 = vsel %vm2981_vm5, %v7300_v1, -inf  ;;  %v2851_v5 = vpop.f32.mrf.mxu0 }
 0x2a0   : > { %3019 = vmax.xlane.f32.xlu1 %v3018_v0  ;;  %v7306_v6 = vsel %vm7222_vm4, -1e+30, %v2851_v5 }
 0x2a1   : > { %3004 = vmax.xlane.f32.xlu0 %v3003_v3  ;;  %v2471_v7 = vpop.f32.mrf.mxu1  ;;  %v6145_v8 = vpop.f32.mrf.mxu0  ;;  %v3024_v10 = vsel %vm2981_vm5, %v7306_v6, -inf }
 0x2a2   : > { %v7310_v9 = vsel %vm7222_vm4, -1e+30, %v2471_v7 }
 0x2a3   : > { %v6120_v19 = vpop.f32.mrf.mxu1  ;;  %v3009_v21 = vsel %vm2981_vm5, %v7310_v9, -inf }
 0x2a4   : > { %3010 = vmax.xlane.f32.xlu1 %v3009_v21 }
 0x2a5   : > { %v2623_v51 = vpop.f32.mrf.mxu1  ;;  %3025 = vmax.xlane.f32.xlu0 %v3024_v10 }
 0x2a6   : > { %v7318_v23 = vsel %vm7222_vm4, -1e+30, %v2623_v51 }
 0x2a7   : > { %v6130_v26 = vpop.f32.mrf.mxu1  ;;  %v3015_v27 = vsel %vm2981_vm5, %v7318_v23, -inf }
 0x2a8   : > { %3016 = vmax.xlane.f32.xlu1 %v3015_v27 }
 0x2a9   : > { %v2775_v28 = vpop.f32.mrf.mxu1 }
 0x2aa   : > { %v7324_v30 = vsel %vm7222_vm4, -1e+30, %v2775_v28 }
 0x2ab   : > { %v6140_v31 = vpop.f32.mrf.mxu1  ;;  %v3021_v33 = vsel %vm2981_vm5, %v7324_v30, -inf }
 0x2ac   : > { %3022 = vmax.xlane.f32.xlu1 %v3021_v33 }
 0x2ad   : > { %v2927_v36 = vpop.f32.mrf.mxu1 }
 0x2ae   : > { %v7330_v37 = vsel %vm7222_vm4, -1e+30, %v2927_v36 }
 0x2af   : > { %v6150_v38 = vpop.f32.mrf.mxu1  ;;  %v3027_v40 = vsel %vm2981_vm5, %v7330_v37, -inf }
 0x2b0   : > { %3028 = vmax.xlane.f32.xlu1 %v3027_v40 }
 0x2b4   : > { %2958 = vmax.xlane.f32.xlu1 %v2957_v41 }
 0x2b8   : > { %2961 = vmax.xlane.f32.xlu1 %v2960_v42 }
 0x2bc   : > { %2964 = vmax.xlane.f32.xlu1 %v2963_v45 }
 0x2c0   : > { %2967 = vmax.xlane.f32.xlu1 %v2966_v17 }
 0x2c4   : > { %2970 = vmax.xlane.f32.xlu1 %v2969_v46 }
 0x2c8   : > { %2973 = vmax.xlane.f32.xlu1 %v2972_v47 }
 0x2cc   : > { %2976 = vmax.xlane.f32.xlu1 %v2975_v48 }
 0x2d0   : > { %2979 = vmax.xlane.f32.xlu1 %v2978_v49 }
 0x30e   : > { %v2984_v50 = vpop.xlane.xlu0 %2983 }
 0x30f   : > { %v3049_v60 = vrot.slane %v2984_v50, %v7352_v55 }
 0x312   : > { %v2990_v57 = vpop.xlane.xlu1 %2989 }
 0x313   : > { %v3057_v2 = vrot.slane %v2990_v57, %v7352_v55 }
 0x316   : > { %v2996_v53 = vpop.xlane.xlu0 %2995 }
 0x317   : > { %v3065_v19 = vrot.slane %v2996_v53, %v7352_v55 }
 0x31a   : > { %v3002_v54 = vpop.xlane.xlu0 %3001 }
 0x31b   : > { %v3073_v31 = vrot.slane %v3002_v54, %v7352_v55 }
 0x31e   : > { %v2987_v58 = vpop.xlane.xlu0 %2986 }
 0x31f   : > { %v3053_v62 = vrot.slane %v2987_v58, %v7352_v55 }
 0x321   : > { %v3111_v63 = vsel %vm3110_vm7, %v3053_v62, %v3049_v60  ;;  %v2993_v0 = vpop.xlane.xlu1 %2992 }
 0x322   : > { %v3061_v3 = vrot.slane %v2993_v0, %v7352_v55  ;;  %v3008_v5 = vpop.xlane.xlu0 %3007  ;;  %v3113_v7 = vsel %vm3112_vm8, %v3057_v2, %v3111_v63 }
 0x323   : > { %v3081_v42 = vrot.slane %v3008_v5, %v7352_v55 }
 0x324   : > { %v3115_v8 = vsel %vm3114_vm9, %v3061_v3, %v3113_v7  ;;  %v6627_v7 = vmov 0  }
 0x325   : > { %v3014_v10 = vpop.xlane.xlu1 %3013  ;;  %v3117_v26 = vsel %vm3116_vm10, %v3065_v19, %v3115_v8  ;;  %6401 = vset.pattern.permute.xlu1 %v6627_v7  ;;  %v7385_v8 = vsub.s32 0, %v7039_v59 }
 0x326   : > { %v2999_v21 = vpop.xlane.xlu0 %2998  ;;  %v3089_v46 = vrot.slane %v3014_v10, %v7352_v55 }
 0x327   : > { %v3069_v51 = vrot.slane %v2999_v21, %v7352_v55  ;;  %v7389_v21 = vsub.s32 1, %v7039_v59 }
 0x329   : > { %v3020_v27 = vpop.xlane.xlu1 %3019  ;;  %v3119_v28 = vsel %vm3118_vm11, %v3069_v51, %v3117_v26  ;;  %v7393_v26 = vsub.s32 2, %v7039_v59 }
 0x32a   : > { %v3005_v33 = vpop.xlane.xlu0 %3004  ;;  %v3121_v38 = vsel %vm3120_vm12, %v3073_v31, %v3119_v28  ;;  %v3097_v54 = vrot.slane %v3020_v27, %v7352_v55  ;;  %v7397_v28 = vsub.s32 3, %v7039_v59 }
 0x32b   : > { %v3077_v36 = vrot.slane %v3005_v33, %v7352_v55 }
 0x32d   : > { %v3011_v40 = vpop.xlane.xlu1 %3010  ;;  %v3123_v41 = vsel %vm3122_vm13, %v3077_v36, %v3121_v38 }
 0x32e   : > { %v3085_v45 = vrot.slane %v3011_v40, %v7352_v55  ;;  %3133 = vxpose.xlu0.b32.start [1/2] (short) (narrow) %v3123_v41, 8  ;;  %v3026_v53 = vpop.xlane.xlu0 %3025 }
 0x32f   : > { %v3105_v60 = vrot.slane %v3026_v53, %v7352_v55 }
 0x330   : > { %v3124_v17 = vsel %vm3110_vm7, %v3085_v45, %v3081_v42 }
 0x331   : > { %v3017_v47 = vpop.xlane.xlu1 %3016  ;;  %v3125_v49 = vsel %vm3112_vm8, %v3089_v46, %v3124_v17 }
 0x332   : > { %v3093_v48 = vrot.slane %v3017_v47, %v7352_v55 }
 0x334   : > { %v3126_v50 = vsel %vm3114_vm9, %v3093_v48, %v3125_v49 }
 0x335   : > { %v3023_v57 = vpop.xlane.xlu1 %3022  ;;  %v3127_v62 = vsel %vm3116_vm10, %v3097_v54, %v3126_v50 }
 0x336   : > { %v3101_v58 = vrot.slane %v3023_v57, %v7352_v55 }
 0x338   : > { %v3128_v63 = vsel %vm3118_vm11, %v3101_v58, %v3127_v62 }
 0x339   : > { %v3029_v0 = vpop.xlane.xlu1 %3028  ;;  %v3129_v3 = vsel %vm3120_vm12, %v3105_v60, %v3128_v63 }
 0x33a   : > { %v3109_v2 = vrot.slane %v3029_v0, %v7352_v55 }
 0x33c   : > { %v3130_v5 = vsel %vm3122_vm13, %v3109_v2, %v3129_v3 }
 0x33d   : > { %3134 = vxpose.xlu0.b32.end [2/2] (short) (narrow) %v3130_v5, 8  ;;  %v2959_v33 = vpop.xlane.xlu1 %2958 }
 0x341   : > { %v2962_v36 = vpop.xlane.xlu1 %2961 }
 0x345   : > { %v2965_v38 = vpop.xlane.xlu1 %2964 }
 0x349   : > { %v2968_v40 = vpop.xlane.xlu1 %2967 }
 0x34d   : > { %v2971_v41 = vpop.xlane.xlu1 %2970 }
 0x351   : > { %v2974_v42 = vpop.xlane.xlu1 %2973 }
 0x355   : > { %v2977_v45 = vpop.xlane.xlu1 %2976 }
 0x359   : > { %v2980_v17 = vpop.xlane.xlu1 %2979 }
 0x366   : > { %6402 = vset.pattern.permute.xlu0 %v6627_v7 }
 0x3b5   : > { %v3149_v10 = vpop.trf.xlu0 }
 0x3b6   : > { %v3169_v19 = vrot.slane %v3149_v10, %v7385_v8  ;;  %v3180_v51 = vrot.slane %v3149_v10, %v7389_v21  ;;  %v3191_v27 = vrot.slane %v3149_v10, %v7393_v26  ;;  %v3202_v31 = vrot.slane %v3149_v10, %v7397_v28 }
 0x3b8   : > { %3175 = vbcast.lane.b32.xlu0 %v3169_v19, 264  ;;  %3171 = vbcast.lane.b32.xlu1 %v3169_v19, 256 }
 0x3bc   : > { %3182 = vbcast.lane.b32.xlu1 %v3180_v51, 256 }
 0x3c0   : > { %3186 = vbcast.lane.b32.xlu1 %v3180_v51, 264 }
 0x3c4   : > { %3193 = vbcast.lane.b32.xlu1 %v3191_v27, 256 }
 0x3c8   : > { %3197 = vbcast.lane.b32.xlu1 %v3191_v27, 264  ;;  %v3294_v27 = vadd.s32 4294967288, %v7215_v12 }
 0x3cc   : > { %3204 = vbcast.lane.b32.xlu1 %v3202_v31, 256 }
 0x3d0   : > { %3208 = vbcast.lane.b32.xlu1 %v3202_v31, 264 }
 0x42a   : > { %v3172_v46 = vpop.permute.xlu1 %3171  ;;  %v3176_v48 = vpop.permute.xlu0 %3175 }
 0x42b   : > { %v3218_v47 = vmax.f32 %v2959_v33, %v3172_v46  ;;  %v3219_v50 = vmax.f32 %v2962_v36, %v3176_v48  ;;  %v3297_v33 = vsub.s32 %v3294_v27, %v7039_v59 }
 0x42d   : > { %3228 = vperm.xlu1 %6401, %v3218_v47  }
 0x42e   : > { %v3183_v49 = vpop.permute.xlu1 %3182 }
 0x42f   : > { %v3220_v54 = vmax.f32 %v2965_v38, %v3183_v49 }
 0x431   : > { %3233 = vperm.xlu1 %6401, %v3219_v50  }
 0x432   : > { %v3187_v53 = vpop.permute.xlu1 %3186 }
 0x433   : > { %v3221_v58 = vmax.f32 %v2968_v40, %v3187_v53 }
 0x435   : > { %3238 = vperm.xlu1 %6401, %v3220_v54  }
 0x436   : > { %v3194_v57 = vpop.permute.xlu1 %3193 }
 0x437   : > { %v3222_v62 = vmax.f32 %v2971_v41, %v3194_v57 }
 0x439   : > { %3243 = vperm.xlu1 %6401, %v3221_v58  }
 0x43a   : > { %v3198_v60 = vpop.permute.xlu1 %3197 }
 0x43b   : > { %v3223_v63 = vmax.f32 %v2974_v42, %v3198_v60 }
 0x43d   : > { %3248 = vperm.xlu1 %6401, %v3222_v62   ;;  %3253 = vperm.xlu0 %6402, %v3223_v63  }
 0x43e   : > { %v3205_v0 = vpop.permute.xlu1 %3204 }
 0x43f   : > { %v3224_v2 = vmax.f32 %v2977_v45, %v3205_v0 }
 0x441   : > { %3258 = vperm.xlu1 %6401, %v3224_v2  }
 0x442   : > { %v3209_v3 = vpop.permute.xlu1 %3208 }
 0x443   : > { %v3225_v5 = vmax.f32 %v2980_v17, %v3209_v3 }
 0x445   : > { %3263 = vperm.xlu1 %6401, %v3225_v5   ;;  %v3793_v5 = vld [vmem:[#allocation5] sm:$0xff] }
 0x446   : > { %6152 = vmatpush3.msra.mxu0 %v3793_v5 }
 0x447   : > { %6161 = vmatprep.subr.mxu0 %v6625_v14 }
 0x4a8   : > { %v7400_v7 = vpop.permute.xlu1 %3228 }
 0x4a9   : > { %v3293_v17 = vrot.slane %v7400_v7, %v7352_v55 }
 0x4ac   : > { %v7402_v10 = vpop.permute.xlu1 %3233 }
 0x4ad   : > { %v3298_v45 = vrot.slane %v7402_v10, %v3297_v33 }
 0x4af   : > { %v3300_v49 = vsel %vm3299_vm14, %v3298_v45, %v3293_v17  ;;  %v3401_v17 = vsub.s32 5, %v7039_v59 }
 0x4b0   : > { %v7404_v19 = vpop.permute.xlu1 %3238 }
 0x4b1   : > { %v3304_v12 = vrot.slane %v7404_v19, %v7352_v55 }
 0x4b4   : > { %v7406_v51 = vpop.permute.xlu1 %3243 }
 0x4b5   : > { %v3308_v38 = vrot.slane %v7406_v51, %v3297_v33 }
 0x4b7   : > { %v3309_v46 = vsel %vm3299_vm14, %v3308_v38, %v3304_v12 }
 0x4b8   : > { %v7409_v31 = vpop.permute.xlu1 %3248  ;;  %v7412_v36 = vpop.permute.xlu0 %3253  ;;  %v3328_v54 = vsel %vm3110_vm7, %v3309_v46, %v3300_v49 }
 0x4b9   : > { %v3317_v40 = vrot.slane %v7412_v36, %v3297_v33  ;;  %v3313_v41 = vrot.slane %v7409_v31, %v7352_v55 }
 0x4bb   : > { %v3318_v47 = vsel %vm3299_vm14, %v3317_v40, %v3313_v41  ;;  %v3394_v40 = vsub.s32 4, %v7039_v59 }
 0x4bc   : > { %v7418_v42 = vpop.permute.xlu1 %3258  ;;  %v3329_v58 = vsel %vm3112_vm8, %v3318_v47, %v3328_v54  ;;  %v3408_v47 = vsub.s32 6, %v7039_v59 }
 0x4bd   : > { %v3322_v50 = vrot.slane %v7418_v42, %v7352_v55 }
 0x4c0   : > { %v7425_v48 = vpop.permute.xlu1 %3263 }
 0x4c1   : > { %v3326_v53 = vrot.slane %v7425_v48, %v3297_v33  ;;  %v3794_v33 = vld [vmem:[#allocation5 + $0x8] sm:$0xff] }
 0x4c2   : > { %6157 = vmatpush3.msra.mxu1 %v3794_v33 }
 0x4c3   : > { %v3327_v57 = vsel %vm3299_vm14, %v3326_v53, %v3322_v50  ;;  %6166 = vmatprep.subr.mxu1 %v6625_v14  ;;  %v3415_v50 = vsub.s32 7, %v7039_v59 }
 0x4c4   : > { %v3330_v60 = vsel %vm3114_vm9, %v3327_v57, %v3329_v58 }
 0x4c5   : > { %3332 = vxpose.xlu0.b32.start.end [1/1] (short) (narrow) %v3330_v60, 16 }
 0x541   : > { %v3348_v62 = vpop.trf.xlu0 }
 0x542   : > { %v3367_v63 = vrot.slane %v3348_v62, %v7385_v8  ;;  %v3374_v2 = vrot.slane %v3348_v62, %v7389_v21  ;;  %v3381_v27 = vrot.slane %v3348_v62, %v7393_v26  ;;  %v3388_v38 = vrot.slane %v3348_v62, %v7397_v28 }
 0x543   : > { %v3395_v41 = vrot.slane %v3348_v62, %v3394_v40  ;;  %v3402_v46 = vrot.slane %v3348_v62, %v3401_v17  ;;  %v3409_v49 = vrot.slane %v3348_v62, %v3408_v47  ;;  %v3416_v53 = vrot.slane %v3348_v62, %v3415_v50 }
 0x544   : > { %3369 = vbcast.lane.b32.xlu1 %v3367_v63, 256 }
 0x545   : > { %v3349_v0 = vpop.trf.xlu0 }
 0x546   : > { %v3437_v3 = vrot.slane %v3349_v0, %v7393_v26  ;;  %v3423_v45 = vrot.slane %v3349_v0, %v7385_v8  ;;  %v3430_v12 = vrot.slane %v3349_v0, %v7389_v21  ;;  %v3444_v54 = vrot.slane %v3349_v0, %v7397_v28 }
 0x547   : > { %v3451_v57 = vrot.slane %v3349_v0, %v3394_v40  ;;  %v3458_v58 = vrot.slane %v3349_v0, %v3401_v17  ;;  %v3465_v60 = vrot.slane %v3349_v0, %v3408_v47  ;;  %v3472_v63 = vrot.slane %v3349_v0, %v3415_v50  ;;  %v3795_v17 = vld [vmem:[#allocation5 + $0x10] sm:$0xff] }
 0x548   : > { %3376 = vbcast.lane.b32.xlu1 %v3374_v2, 256  ;;  %3439 = vbcast.lane.b32.xlu0 %v3437_v3, 256 }
 0x54c   : > { %3383 = vbcast.lane.b32.xlu1 %v3381_v27, 256 }
 0x550   : > { %3390 = vbcast.lane.b32.xlu1 %v3388_v38, 256 }
 0x554   : > { %3397 = vbcast.lane.b32.xlu1 %v3395_v41, 256 }
 0x558   : > { %3425 = vbcast.lane.b32.xlu1 %v3423_v45, 256 }
 0x55c   : > { %3432 = vbcast.lane.b32.xlu1 %v3430_v12, 256 }
 0x560   : > { %3404 = vbcast.lane.b32.xlu1 %v3402_v46, 256 }
 0x564   : > { %3411 = vbcast.lane.b32.xlu1 %v3409_v49, 256 }
 0x568   : > { %3418 = vbcast.lane.b32.xlu1 %v3416_v53, 256 }
 0x56c   : > { %3446 = vbcast.lane.b32.xlu1 %v3444_v54, 256 }
 0x570   : > { %3453 = vbcast.lane.b32.xlu1 %v3451_v57, 256 }
 0x574   : > { %3460 = vbcast.lane.b32.xlu1 %v3458_v58, 256  ;;  %v3797_v58 = vld [vmem:[#allocation5 + $0x20] sm:$0xff] }
 0x578   : > { %3467 = vbcast.lane.b32.xlu1 %v3465_v60, 256 }
 0x57c   : > { %3474 = vbcast.lane.b32.xlu1 %v3472_v63, 256 }
 0x5b6   : > { %v3370_v2 = vpop.permute.xlu1 %3369 }
 0x5b7   : > { %v3476_v3 = vsub.f32 %v7230_v20, %v3370_v2 }
 0x5b9   : > { %v3492_v5 = vmul.f32 1.442695, %v3476_v3 }
 0x5ba   : > { %v3377_v27 = vpop.permute.xlu1 %3376  ;;  %v3440_v49 = vpop.permute.xlu0 %3439 }
 0x5bb   : > { %6403 = vpow2.f32 %v3492_v5  ;;  %v3477_v59 = vsub.f32 %v7264_v39, %v3377_v27 }
 0x5bd   : > { %v3494_v62 = vmul.f32 1.442695, %v3477_v59 }
 0x5be   : > { %v3384_v33 = vpop.permute.xlu1 %3383 }
 0x5bf   : > { %6405 = vpow2.f32 %v3494_v62  ;;  %v3478_v38 = vsub.f32 %v7240_v25, %v3384_v33 }
 0x5c1   : > { %v3496_v40 = vmul.f32 1.442695, %v3478_v38 }
 0x5c2   : > { %v3391_v41 = vpop.permute.xlu1 %3390 }
 0x5c3   : > { %6407 = vpow2.f32 %v3496_v40  ;;  %v3479_v45 = vsub.f32 %v7274_v44, %v3391_v41  ;;  %v3796_v44 = vld [vmem:[#allocation5 + $0x18] sm:$0xff]  ;;  %v3799_v40 = vld [vmem:[#allocation5 + $0x30] sm:$0xff] }
 0x5c5   : > { %v3498_v0 = vmul.f32 1.442695, %v3479_v45 }
 0x5c6   : > { %v3398_v12 = vpop.permute.xlu1 %3397 }
 0x5c7   : > { %6409 = vpow2.f32 %v3498_v0  ;;  %v3480_v20 = vsub.f32 %v7248_v29, %v3398_v12  ;;  %v3486_v29 = vsub.f32 %v7282_v52, %v3440_v49 }
 0x5c8   : > { %v6404_v46 = vpop.eup %6403 }
 0x5c9   : > { %v3500_v47 = vmul.f32 1.442695, %v3480_v20  ;;  %6154 = vmatmul.mubr.msk.f32.vlgmr.msra.gmra.mxu0 %vm3809_vm15, %v6404_v46  ;;  %v3548_v39 = vsel %vm2981_vm5, %v6404_v46, 0.0  ;;  %v3512_v63 = vmul.f32 1.442695, %v3486_v29  ;;  %v3800_v29 = vld [vmem:[#allocation5 + $0x38] sm:$0xff] }
 0x5ca   : > { %3549 = vadd.xlane.f32.xlu1 %v3548_v39  ;;  %v3426_v25 = vpop.permute.xlu1 %3425  ;;  %6162 = vmatpush3.msra.mxu0 %v3795_v17 }
 0x5cb   : > { %6411 = vpow2.f32 %v3500_v47  ;;  %6163 = vmatprep.mubr.msk.f32.mxu0 %vm6626_vm3, %v6625_v14  ;;  %6171 = vmatprep.subr.mxu0 %v6625_v14  ;;  %v3484_v59 = vsub.f32 %v7270_v43, %v3426_v25 }
 0x5cc   : > { %v6406_v50 = vpop.eup %6405 }
 0x5cd   : > { %6159 = vmatmul.mubr.msk.f32.vlgmr.msra.gmra.mxu1 %vm3809_vm15, %v6406_v50  ;;  %v3551_v53 = vsel %vm2981_vm5, %v6406_v50, 0.0  ;;  %v3508_v45 = vmul.f32 1.442695, %v3484_v59  ;;  %v3268_v59 = vsub.f32 %v7244_v15, %v7404_v19 }
 0x5ce   : > { %3552 = vadd.xlane.f32.xlu0 %v3551_v53  ;;  %v3433_v54 = vpop.permute.xlu1 %3432  ;;  %6167 = vmatpush3.msra.mxu1 %v3796_v44 }
 0x5cf   : > { %v3485_v57 = vsub.f32 %v7310_v9, %v3433_v54  ;;  %6168 = vmatprep.mubr.msk.f32.mxu1 %vm6626_vm3, %v6625_v14  ;;  %6176 = vmatprep.subr.mxu1 %v6625_v14  ;;  %v3798_v9 = vld [vmem:[#allocation5 + $0x28] sm:$0xff]  ;;  %v3278_v19 = vmul.f32 1.442695, %v3268_v59 }
 0x5d0   : > { %v6408_v60 = vpop.eup %6407 }
 0x5d1   : > { %v3510_v2 = vmul.f32 1.442695, %v3485_v57  ;;  %6164 = vmatmul.mubr.msk.f32.vlgmr.msra.gmra.mxu0 %vm3809_vm15, %v6408_v60  ;;  %v3554_v52 = vsel %vm2981_vm5, %v6408_v60, 0.0 }
 0x5d2   : > { %3555 = vadd.xlane.f32.xlu1 %v3554_v52  ;;  %v3405_v3 = vpop.permute.xlu1 %3404  ;;  %6172 = vmatpush3.msra.mxu0 %v3797_v58 }
 0x5d3   : > { %6413 = vpow2.f32 %v3510_v2  ;;  %v3481_v5 = vsub.f32 %v7288_v56, %v3405_v3  ;;  %6173 = vmatprep.mubr.msk.f32.mxu0 %vm6626_vm3, %v6625_v14  ;;  %6181 = vmatprep.subr.mxu0 %v6625_v14 }
 0x5d4   : > { %v6410_v27 = vpop.eup %6409  ;;  %6415 = vpow2.f32 %v3512_v63  ;;  %v3266_v63 = vsub.f32 %v7234_v22, %v7400_v7  ;;  %v3802_v22 = vld [vmem:[#allocation5 + $0x48] sm:$0xff] }
 0x5d5   : > { %v3502_v62 = vmul.f32 1.442695, %v3481_v5  ;;  %6169 = vmatmul.mubr.msk.f32.vlgmr.msra.gmra.mxu1 %vm3809_vm15, %v6410_v27  ;;  %v3557_v33 = vsel %vm2981_vm5, %v6410_v27, 0.0 }
 0x5d6   : > { %3558 = vadd.xlane.f32.xlu1 %v3557_v33  ;;  %v3412_v38 = vpop.permute.xlu1 %3411  ;;  %6177 = vmatpush3.msra.mxu1 %v3798_v9  ;;  %v3274_v27 = vmul.f32 1.442695, %v3266_v63 }
 0x5d7   : > { %6417 = vpow2.f32 %v3502_v62  ;;  %v3482_v56 = vsub.f32 %v7256_v34, %v3412_v38  ;;  %6178 = vmatprep.mubr.msk.f32.mxu1 %vm6626_vm3, %v6625_v14  ;;  %6186 = vmatprep.subr.mxu1 %v6625_v14  ;;  %v3803_v62 = vld [vmem:[#allocation5 + $0x50] sm:$0xff] }
 0x5d8   : > { %v6412_v41 = vpop.eup %6411 }
 0x5d9   : > { %v3504_v43 = vmul.f32 1.442695, %v3482_v56  ;;  %6174 = vmatmul.mubr.msk.f32.vlgmr.msra.gmra.mxu0 %vm3809_vm15, %v6412_v41  ;;  %v3560_v0 = vsel %vm2981_vm5, %v6412_v41, 0.0 }
 0x5da   : > { %3561 = vadd.xlane.f32.xlu0 %v3560_v0  ;;  %v3419_v12 = vpop.permute.xlu1 %3418  ;;  %6182 = vmatpush3.msra.mxu0 %v3799_v40  ;;  %v3269_v40 = vsub.f32 %v7236_v24, %v7406_v51  ;;  %v3805_v24 = vld [vmem:[#allocation5 + $0x60] sm:$0xff] }
 0x5db   : > { %6419 = vpow2.f32 %v3504_v43  ;;  %v3483_v20 = vsub.f32 %v7300_v1, %v3419_v12  ;;  %6183 = vmatprep.mubr.msk.f32.mxu0 %vm6626_vm3, %v6625_v14  ;;  %6191 = vmatprep.subr.mxu0 %v6625_v14  ;;  %v3272_v43 = vsub.f32 %v7258_v35, %v7418_v42  ;;  %v3806_v42 = vld [vmem:[#allocation5 + $0x68] sm:$0xff] }
 0x5dc   : > { %6421 = vpow2.f32 %v3508_v45 }
 0x5dd   : > { %v3506_v34 = vmul.f32 1.442695, %v3483_v20  ;;  %v3286_v12 = vmul.f32 1.442695, %v3272_v43  ;;  %v3273_v20 = vsub.f32 %v7252_v32, %v7425_v48  ;;  %v3808_v48 = vld [vmem:[#allocation5 + $0x78] sm:$0xff] }
 0x5de   : > { %v3447_v17 = vpop.permute.xlu1 %3446 }
 0x5df   : > { %6423 = vpow2.f32 %v3506_v34  ;;  %v3487_v46 = vsub.f32 %v7318_v23, %v3447_v17  ;;  %v3807_v34 = vld [vmem:[#allocation5 + $0x70] sm:$0xff] }
 0x5e0   : > { %v7484_v47 = vpop.eup %6413 }
 0x5e1   : > { %v3514_v39 = vmul.f32 1.442695, %v3487_v46  ;;  %v3575_v49 = vsel %vm2981_vm5, %v7484_v47, 0.0  ;;  %v6416_v25 = vpop.eup %6415  ;;  %v7549_v46 = vld [vmem:[%s7539_s14 + $0x8] sm:$0xff] }
 0x5e2   : > { %3576 = vadd.xlane.f32.xlu1 %v3575_v49  ;;  %v3454_v1 = vpop.permute.xlu1 %3453  ;;  %v3578_v54 = vsel %vm2981_vm5, %v6416_v25, 0.0 }
 0x5e3   : > { %6425 = vpow2.f32 %v3514_v39  ;;  %v3488_v44 = vsub.f32 %v7294_v61, %v3454_v1  ;;  %v3801_v61 = vld [vmem:[#allocation5 + $0x40] sm:$0xff]  ;;  %v7556_v39 = vld [vmem:[%s7539_s14 + $0x18] sm:$0xff] }
 0x5e4   : > { %v6418_v50 = vpop.eup %6417 }
 0x5e5   : > { %v3516_v53 = vmul.f32 1.442695, %v3488_v44  ;;  %6179 = vmatmul.mubr.msk.f32.vlgmr.msra.gmra.mxu1 %vm3809_vm15, %v6418_v50  ;;  %v3563_v23 = vsel %vm2981_vm5, %v6418_v50, 0.0 }
 0x5e6   : > { %3579 = vadd.xlane.f32.xlu1 %v3578_v54  ;;  %3564 = vadd.xlane.f32.xlu0 %v3563_v23  ;;  %v3461_v57 = vpop.permute.xlu1 %3460  ;;  %v7581_v23 = vld [vmem:[%s7539_s14 + $0x10] sm:$0xff] }
 0x5e7   : > { %6427 = vpow2.f32 %v3516_v53  ;;  %v3489_v58 = vsub.f32 %v7324_v30, %v3461_v57  ;;  %6187 = vmatpush3.msra.mxu1 %v3800_v29  ;;  %6188 = vmatprep.mubr.msk.f32.mxu1 %vm6626_vm3, %v6625_v14  ;;  %v3267_v30 = vsub.f32 %v7226_v18, %v7402_v10  ;;  %v3270_v10 = vsub.f32 %v7219_v16, %v7409_v31  ;;  %v3804_v16 = vld [vmem:[#allocation5 + $0x58] sm:$0xff]  ;;  %v7572_v29 = vld [vmem:[%s7539_s14 + $0x28] sm:$0xff]  ;;  %v7584_v57 = vld [vmem:[%s7539_s14 + $0x20] sm:$0xff] }
 0x5e8   : > { %v6420_v60 = vpop.eup %6419  ;;  %6196 = vmatprep.subr.mxu1 %v6625_v14  ;;  %v3271_v31 = vsub.f32 %v7217_v13, %v7412_v36  ;;  %v3280_v36 = vmul.f32 1.442695, %v3269_v40 }
 0x5e9   : > { %v3518_v2 = vmul.f32 1.442695, %v3489_v58  ;;  %6184 = vmatmul.mubr.msk.f32.vlgmr.msra.gmra.mxu0 %vm3809_vm15, %v6420_v60  ;;  %v3566_v52 = vsel %vm2981_vm5, %v6420_v60, 0.0  ;;  %v6422_v3 = vpop.eup %6421  ;;  %v3282_v51 = vmul.f32 1.442695, %v3270_v10  ;;  %v7592_v60 = vld [vmem:[%s7539_s14 + $0x38] sm:$0xff] }
 0x5ea   : > { %3567 = vadd.xlane.f32.xlu0 %v3566_v52  ;;  %v3468_v5 = vpop.permute.xlu1 %3467  ;;  %6192 = vmatpush3.msra.mxu0 %v3801_v61  ;;  %v3572_v18 = vsel %vm2981_vm5, %v6422_v3, 0.0  ;;  %v3284_v0 = vmul.f32 1.442695, %v3271_v31  ;;  %v7599_v52 = vld [vmem:[%s7539_s14 + $0x30] sm:$0xff] }
 0x5eb   : > { %6429 = vpow2.f32 %v3518_v2  ;;  %v3490_v9 = vsub.f32 %v7306_v6, %v3468_v5  ;;  %6193 = vmatprep.mubr.msk.f32.mxu0 %vm6626_vm3, %v6625_v14  ;;  %6201 = vmatprep.subr.mxu0 %v6625_v14  ;;  %v3276_v6 = vmul.f32 1.442695, %v3267_v30 }
 0x5ec   : > { %v6424_v7 = vpop.eup %6423 }
 0x5ed   : > { %v3520_v33 = vmul.f32 1.442695, %v3490_v9  ;;  %6189 = vmatmul.mubr.msk.f32.vlgmr.msra.gmra.mxu1 %vm3809_vm15, %v6424_v7  ;;  %6194 = vmatmul.mubr.msk.f32.vlgmr.msra.gmra.mxu0 %vm3809_vm15, %v6422_v3  ;;  %v3569_v41 = vsel %vm2981_vm5, %v6424_v7, 0.0 }
 0x5ee   : > { %3573 = vadd.xlane.f32.xlu0 %v3572_v18  ;;  %v3475_v38 = vpop.permute.xlu1 %3474  ;;  %6197 = vmatpush3.msra.mxu1 %v3802_v22 }
 0x5ef   : > { %6431 = vpow2.f32 %v3520_v33  ;;  %v3491_v56 = vsub.f32 %v7330_v37, %v3475_v38  ;;  %6198 = vmatprep.mubr.msk.f32.mxu1 %vm6626_vm3, %v6625_v14  ;;  %6202 = vmatpush3.msra.mxu0 %v3803_v62 }
 0x5f0   : > { %v6426_v15 = vpop.eup %6425  ;;  %6433 = vpow2.f32 %v3274_v27  ;;  %6203 = vmatprep.mubr.msk.f32.mxu0 %vm6626_vm3, %v6625_v14  ;;  %6206 = vmatprep.subr.mxu1 %v6625_v14 }
 0x5f1   : > { %v3522_v37 = vmul.f32 1.442695, %v3491_v56  ;;  %6199 = vmatmul.mubr.msk.f32.vlgmr.msra.gmra.mxu1 %vm3809_vm15, %v7484_v47  ;;  %6204 = vmatmul.mubr.msk.f32.vlgmr.msra.gmra.mxu0 %vm3809_vm15, %v6416_v25  ;;  %v3581_v45 = vsel %vm2981_vm5, %v6426_v15, 0.0  ;;  %6435 = vpow2.f32 %v3276_v6  ;;  %v3288_v47 = vmul.f32 1.442695, %v3273_v20  ;;  %v7561_v25 = vld [vmem:[%s7539_s14] sm:$0xff] }
 0x5f2   : > { %3570 = vadd.xlane.f32.xlu0 %v3569_v41  ;;  %3582 = vadd.xlane.f32.xlu1 %v3581_v45  ;;  %s5876_s14 = sshll.u32 %s6603_s30, 4  ;;  %s5669_s30 = sshll.u32 %s6799_s10, 4  ;;  %s7772_s30 = int_to_ptr.vmem [resolvable:$true] %s5669_s30 }
 0x5f3   : > { %6437 = vpow2.f32 %v3522_v37  ;;  %6211 = vmatprep.subr.mxu0 %v6625_v14  ;;  %6207 = vmatpush3.msra.mxu1 %v3804_v16  ;;  %s6495_s12 = scalar_lea.vmem %s7772_s30, 1024  ;;  %p6502_p9 = scmp.lt.s32.totalorder %s7772_s30, %s6500_s5 }
 0x5f4   : > { %v6428_v13 = vpop.eup %6427  ;;  %6208 = vmatprep.mubr.msk.f32.mxu1 %vm6626_vm3, %v6625_v14  ;;  %6212 = vmatpush3.msra.mxu0 %v3805_v24  ;;  %6439 = vpow2.f32 %v3278_v19  ;;  %p6496_p7 = scmp.ne.s32.totalorder %s7772_s30, %s6495_s12  ;;  %p6503_p10 = scmp.lt.s32.totalorder %s6501_s17, %s6495_s12 }
 0x5f5   : > { %6213 = vmatprep.mubr.msk.f32.mxu0 %vm6626_vm3, %v6625_v14  ;;  %6209 = vmatmul.mubr.msk.f32.vlgmr.msra.gmra.mxu1 %vm3809_vm15, %v6426_v15  ;;  %v3584_v35 = vsel %vm2981_vm5, %v6428_v13, 0.0  ;;  %6441 = vpow2.f32 %v3282_v51 }
 0x5f6   : > { %6214 = vmatmul.mubr.msk.f32.vlgmr.msra.gmra.mxu0 %vm3809_vm15, %v6428_v13  ;;  %3585 = vadd.xlane.f32.xlu1 %v3584_v35  ;;  %6443 = vpow2.f32 %v3280_v36  ;;  %p6497_p5 = pnand %p6496_p7, %p6751_p12  ;;  %p6504_p11 = por %p6503_p10, %p6502_p9 }
 0x5f7   : > { %6216 = vmatprep.subr.mxu1 %v6625_v14  ;;  %6218 = vmatprep.mubr.msk.f32.mxu1 %vm6626_vm3, %v6625_v14  ;;  %6445 = vpow2.f32 %v3284_v0 }
 0x5f8   : > { %v6430_v17 = vpop.eup %6429  ;;  %6217 = vmatpush3.msra.mxu1 %v3806_v42  ;;  %6221 = vmatprep.subr.mxu0 %v6625_v14  ;;  %6447 = vpow2.f32 %v3286_v12  ;;  %p6498_p8 = pneg %p6497_p5 }
 0x5f9   : > { %6219 = vmatmul.mubr.msk.f32.vlgmr.msra.gmra.mxu1 %vm3809_vm15, %v6430_v17  ;;  %v3587_v32 = vsel %vm2981_vm5, %v6430_v17, 0.0  ;;  %6222 = vmatpush3.msra.mxu0 %v3807_v34  ;;  %6449 = vpow2.f32 %v3288_v47 }
 0x5fa   : > { %3588 = vadd.xlane.f32.xlu1 %v3587_v32  ;;  %6223 = vmatprep.mubr.msk.f32.mxu0 %vm6626_vm3, %v6625_v14  ;;  %p6505_p13 = pnand %p6504_p11, %p6498_p8 }
 0x5fb   : > { %6231 = vmatprep.subr.mxu0 %v7549_v46  ;;  %6226 = vmatprep.subr.mxu1 %v6625_v14 }
 0x5fc   : > { %v6432_v49 = vpop.eup %6431  ;;  %6227 = vmatpush3.msra.mxu1 %v3808_v48  ;;  %6228 = vmatprep.mubr.msk.f32.mxu1 %vm6626_vm3, %v6625_v14 }
 0x5fd   : > { %v6434_v1 = vpop.eup %6433  ;;  %6224 = vmatmul.mubr.msk.f32.vlgmr.msra.gmra.mxu0 %vm3809_vm15, %v6432_v49  ;;  %v3590_v44 = vsel %vm2981_vm5, %v6432_v49, 0.0  ;;  %6238 = vmatprep.subr.mxu1 %v7556_v39 }
 0x5fe   : > { %6232 = vmatpush3.msra.mxu0 %v7549_v46  ;;  %6235 = vmatprep.mubr.msk.f32.mxu0 %vm2956_vm6, %v6434_v1  ;;  %v6436_v50 = vpop.eup %6435  ;;  %v3524_v3 = vsel %vm2956_vm6, %v6434_v1, 0.0 }
 0x5ff   : > { %3591 = vadd.xlane.f32.xlu0 %v3590_v44  ;;  %6233 = vmatprep.subr.mxu0 %v7561_v25  ;;  %v3527_v5 = vsel %vm2956_vm6, %v6436_v50, 0.0 }
 0x600   : > { %v6438_v14 = vpop.eup %6437  ;;  %6234 = vmatpush3.msra.mxu0 %v7561_v25 }
 0x601   : > { %6229 = vmatmul.mubr.msk.f32.vlgmr.msra.gmra.mxu1 %vm3809_vm15, %v6438_v14  ;;  %6236 = vmatmul.mubr.msk.f32.vlgmr.msra.gmra.mxu0 %vm2956_vm6, %v6436_v50  ;;  %v3593_v53 = vsel %vm2981_vm5, %v6438_v14, 0.0  ;;  %v6440_v54 = vpop.eup %6439 }
 0x602   : > { %6245 = vmatprep.subr.mxu0 %v7572_v29  ;;  %6239 = vmatpush3.msra.mxu1 %v7556_v39  ;;  %v6442_v58 = vpop.eup %6441  ;;  %v3530_v9 = vsel %vm2956_vm6, %v6440_v54, 0.0 }
 0x603   : > { %6242 = vmatprep.mubr.msk.f32.mxu1 %vm2956_vm6, %v6440_v54  ;;  %6246 = vmatpush3.msra.mxu0 %v7572_v29  ;;  %v6444_v61 = vpop.eup %6443  ;;  %v3536_v7 = vsel %vm2956_vm6, %v6442_v58, 0.0 }
 0x604   : > { %6249 = vmatprep.mubr.msk.f32.mxu0 %vm2956_vm6, %v6442_v58  ;;  %3594 = vadd.xlane.f32.xlu1 %v3593_v53  ;;  %v6446_v63 = vpop.eup %6445  ;;  %v3533_v22 = vsel %vm2956_vm6, %v6444_v61, 0.0 }
 0x605   : > { %6240 = vmatprep.subr.mxu1 %v7581_v23  ;;  %6247 = vmatprep.subr.mxu0 %v7584_v57  ;;  %v6448_v2 = vpop.eup %6447  ;;  %v3539_v27 = vsel %vm2956_vm6, %v6446_v63, 0.0 }
 0x606   : > { %6241 = vmatpush3.msra.mxu1 %v7581_v23  ;;  %6248 = vmatpush3.msra.mxu0 %v7584_v57  ;;  %v6450_v30 = vpop.eup %6449  ;;  %v3542_v59 = vsel %vm2956_vm6, %v6448_v2, 0.0 }
 0x607   : > { %6243 = vmatmul.mubr.msk.f32.vlgmr.msra.gmra.mxu1 %vm2956_vm6, %v6444_v61  ;;  %6250 = vmatmul.mubr.msk.f32.vlgmr.msra.gmra.mxu0 %vm2956_vm6, %v6446_v63  ;;  %v3545_v62 = vsel %vm2956_vm6, %v6450_v30, 0.0 }
 0x608   : > { %6252 = vmatprep.subr.mxu1 %v7592_v60  ;;  %6256 = vmatprep.mubr.msk.f32.mxu1 %vm2956_vm6, %v6448_v2 }
 0x609   : > { %6253 = vmatpush3.msra.mxu1 %v7592_v60  ;;  %3525 = vadd.xlane.f32.xlu1 %v3524_v3 }
 0x60a   : > { %6254 = vmatprep.subr.mxu1 %v7599_v52 }
 0x60b   : > { %6255 = vmatpush3.msra.mxu1 %v7599_v52 }
 0x60c   : > { %6257 = vmatmul.mubr.msk.f32.vlgmr.msra.gmra.mxu1 %vm2956_vm6, %v6450_v30 }
 0x60d   : > { %3528 = vadd.xlane.f32.xlu1 %v3527_v5 }
 0x611   : > { %3531 = vadd.xlane.f32.xlu1 %v3530_v9 }
 0x615   : > { %3534 = vadd.xlane.f32.xlu1 %v3533_v22 }
 0x619   : > { %3537 = vadd.xlane.f32.xlu1 %v3536_v7 }
 0x61d   : > { %3540 = vadd.xlane.f32.xlu1 %v3539_v27 }
 0x621   : > { %3543 = vadd.xlane.f32.xlu1 %v3542_v59 }
 0x625   : > { %3546 = vadd.xlane.f32.xlu1 %v3545_v62 }
 0x653   : > { %v3550_v33 = vpop.xlane.xlu1 %3549 }
 0x654   : > { %v3615_v31 = vrot.slane %v3550_v33, %v7352_v55 }
 0x657   : > { %v3553_v18 = vpop.xlane.xlu0 %3552 }
 0x658   : > { %v3619_v40 = vrot.slane %v3553_v18, %v7352_v55 }
 0x65a   : > { %v3676_v51 = vsel %vm3110_vm7, %v3619_v40, %v3615_v31 }
 0x65b   : > { %v3556_v6 = vpop.xlane.xlu1 %3555 }
 0x65c   : > { %v3623_v16 = vrot.slane %v3556_v6, %v7352_v55 }
 0x65e   : > { %v3677_v13 = vsel %vm3112_vm8, %v3623_v16, %v3676_v51 }
 0x65f   : > { %v3559_v38 = vpop.xlane.xlu1 %3558 }
 0x660   : > { %v3627_v37 = vrot.slane %v3559_v38, %v7352_v55 }
 0x662   : > { %v3678_v0 = vsel %vm3114_vm9, %v3627_v37, %v3677_v13 }
 0x663   : > { %v3562_v10 = vpop.xlane.xlu0 %3561 }
 0x664   : > { %v3631_v41 = vrot.slane %v3562_v10, %v7352_v55 }
 0x666   : > { %v3679_v35 = vsel %vm3116_vm10, %v3631_v41, %v3678_v0 }
 0x66b   : > { %v3577_v15 = vpop.xlane.xlu1 %3576 }
 0x66c   : > { %v3651_v49 = vrot.slane %v3577_v15, %v7352_v55 }
 0x66f   : > { %v3565_v56 = vpop.xlane.xlu0 %3564  ;;  %v3580_v45 = vpop.xlane.xlu1 %3579 }
 0x670   : > { %v3635_v43 = vrot.slane %v3565_v56, %v7352_v55  ;;  %v3655_v53 = vrot.slane %v3580_v45, %v7352_v55 }
 0x672   : > { %v3680_v20 = vsel %vm3118_vm11, %v3635_v43, %v3679_v35 }
 0x673   : > { %v3568_v19 = vpop.xlane.xlu0 %3567 }
 0x674   : > { %v3639_v36 = vrot.slane %v3568_v19, %v7352_v55 }
 0x676   : > { %v3681_v17 = vsel %vm3120_vm12, %v3639_v36, %v3680_v20 }
 0x677   : > { %v3574_v24 = vpop.xlane.xlu0 %3573 }
 0x678   : > { %v3647_v47 = vrot.slane %v3574_v24, %v7352_v55 }
 0x67a   : > { %v3683_v44 = vsel %vm3110_vm7, %v3651_v49, %v3647_v47 }
 0x67b   : > { %v3571_v42 = vpop.xlane.xlu0 %3570  ;;  %v3583_v12 = vpop.xlane.xlu1 %3582  ;;  %v3684_v63 = vsel %vm3112_vm8, %v3655_v53, %v3683_v44 }
 0x67c   : > { %v3643_v34 = vrot.slane %v3571_v42, %v7352_v55  ;;  %v3659_v50 = vrot.slane %v3583_v12, %v7352_v55 }
 0x67e   : > { %v3682_v32 = vsel %vm3122_vm13, %v3643_v34, %v3681_v17  ;;  %v3685_v30 = vsel %vm3114_vm9, %v3659_v50, %v3684_v63 }
 0x67f   : > { %3692 = vxpose.xlu0.b32.start [1/2] (short) (narrow) %v3682_v32, 8  ;;  %v3586_v48 = vpop.xlane.xlu1 %3585 }
 0x680   : > { %v3663_v54 = vrot.slane %v3586_v48, %v7352_v55 }
 0x682   : > { %v3686_v5 = vsel %vm3116_vm10, %v3663_v54, %v3685_v30 }
 0x683   : > { %v3589_v1 = vpop.xlane.xlu1 %3588 }
 0x684   : > { %v3667_v61 = vrot.slane %v3589_v1, %v7352_v55 }
 0x686   : > { %v3687_v7 = vsel %vm3118_vm11, %v3667_v61, %v3686_v5 }
 0x688   : > { %v3592_v14 = vpop.xlane.xlu0 %3591 }
 0x689   : > { %v3879_v58 = vpop.f32.mrf.mxu0  ;;  %v3671_v2 = vrot.slane %v3592_v14, %v7352_v55 }
 0x68b   : > { %v6155_v3 = vpop.f32.mrf.mxu0  ;;  %v3688_v59 = vsel %vm3120_vm12, %v3671_v2, %v3687_v7 }
 0x68d   : > { %v3595_v9 = vpop.xlane.xlu1 %3594  ;;  %v3952_v22 = vpop.f32.mrf.mxu1 }
 0x68e   : > { %v3675_v27 = vrot.slane %v3595_v9, %v7352_v55 }
 0x68f   : > { %v6160_v62 = vpop.f32.mrf.mxu1 }
 0x690   : > { %v3689_v33 = vsel %vm3122_vm13, %v3675_v27, %v3688_v59 }
 0x691   : > { %3693 = vxpose.xlu0.b32.end [2/2] (short) (narrow) %v3689_v33, 8  ;;  %v4025_v18 = vpop.f32.mrf.mxu0 }
 0x692   : > { %v4978_v6 = vcombine.low %v3879_v58, %v4025_v18 }
 0x693   : > { %v6165_v10 = vpop.f32.mrf.mxu0 }
 0x694   : > { %v4985_v19 = vrot.slane %v4978_v6, %v7058_v4 }
 0x695   : > { %v4098_v38 = vpop.f32.mrf.mxu1 }
 0x696   : > { %v4986_v56 = vcombine.low %v3952_v22, %v4098_v38 }
 0x697   : > { %v6170_v15 = vpop.f32.mrf.mxu1 }
 0x698   : > { %v4993_v40 = vrot.slane %v4986_v56, %v7058_v4 }
 0x699   : > { %v4171_v16 = vpop.f32.mrf.mxu0 }
 0x69a   : > { %v5010_v31 = vcombine.low %v4985_v19, %v4993_v40  ;;  %v5011_v37 = vcombine.high %v4985_v19, %v4993_v40 }
 0x69b   : > { %v6175_v55 = vpop.f32.mrf.mxu0 }
 0x69c   : > { %v7650_v44 = vrot.slane %v5010_v31, %v7070_v11  ;;  %v7656_v14 = vrot.slane %v5011_v37, %v7070_v11 }
 0x6a5   : > { %v4244_v41 = vpop.f32.mrf.mxu1 }
 0x6a7   : > { %v6180_v45 = vpop.f32.mrf.mxu1 }
 0x6a9   : > { %v4317_v24 = vpop.f32.mrf.mxu0 }
 0x6aa   : > { %v4994_v51 = vcombine.low %v4171_v16, %v4317_v24 }
 0x6ab   : > { %v6185_v43 = vpop.f32.mrf.mxu0 }
 0x6ac   : > { %v5001_v12 = vrot.slane %v4994_v51, %v7058_v4 }
 0x6ad   : > { %v4390_v13 = vpop.f32.mrf.mxu1  ;;  %v4463_v36 = vpop.f32.mrf.mxu0 }
 0x6ae   : > { %v5002_v0 = vcombine.low %v4244_v41, %v4390_v13 }
 0x6af   : > { %v6190_v35 = vpop.f32.mrf.mxu1  ;;  %v6195_v42 = vpop.f32.mrf.mxu0 }
 0x6b0   : > { %v5009_v20 = vrot.slane %v5002_v0, %v7058_v4  ;;  %v5489_v42 = vld [vmem:[%s7844_s3 + $0x18] sm:$0xff] }
 0x6b1   : > { %v4536_v34 = vpop.f32.mrf.mxu1  ;;  %v4609_v17 = vpop.f32.mrf.mxu0  ;;  %6259 = vmatprep.subr.mxu0 %v5489_v42 }
 0x6b2   : > { %v5026_v32 = vcombine.low %v5001_v12, %v5009_v20  ;;  %v5027_v48 = vcombine.high %v5001_v12, %v5009_v20  ;;  %v5046_v47 = vcombine.low %v4463_v36, %v4609_v17  ;;  %6260 = vmatpush3.msra.mxu0 %v5489_v42 }
 0x6b3   : > { %v6200_v49 = vpop.f32.mrf.mxu1  ;;  %v6205_v1 = vpop.f32.mrf.mxu0 }
 0x6b4   : > { %v7653_v50 = vrot.slane %v5026_v32, %v7070_v11  ;;  %v7659_v53 = vrot.slane %v5027_v48, %v7070_v11  ;;  %v5053_v9 = vrot.slane %v5046_v47, %v7058_v4 }
 0x6b5   : > { %v4682_v54 = vpop.f32.mrf.mxu1 }
 0x6b6   : > { %v5054_v58 = vcombine.low %v4536_v34, %v4682_v54  ;;  %v4755_v61 = vpop.f32.mrf.mxu0  ;;  %v5042_v63 = vcombine.low %v7650_v44, %v7653_v50  ;;  %v5043_v2 = vcombine.high %v7650_v44, %v7653_v50  ;;  %v5044_v3 = vcombine.low %v7656_v14, %v7659_v53 }
 0x6b7   : > { %v6210_v30 = vpop.f32.mrf.mxu1  ;;  %v5045_v5 = vcombine.high %v7656_v14, %v7659_v53  ;;  %v5864_v14 = vld [vmem:[%s7845_s4] ss:$0 sm:$0xff] }
 0x6b8   : > { %v5061_v22 = vrot.slane %v5054_v58, %v7058_v4  ;;  %v6215_v7 = vpop.f32.mrf.mxu0 }
 0x6b9   : > { %v4828_v27 = vpop.f32.mrf.mxu1 }
 0x6ba   : > { %v5078_v59 = vcombine.low %v5053_v9, %v5061_v22  ;;  %v5079_v62 = vcombine.high %v5053_v9, %v5061_v22 }
 0x6bb   : > { %v6220_v33 = vpop.f32.mrf.mxu1 }
 0x6bc   : > { %v7674_v37 = vrot.slane %v5078_v59, %v7070_v11  ;;  %v7680_v41 = vrot.slane %v5079_v62, %v7070_v11 }
 0x6bd   : > { %v4901_v18 = vpop.f32.mrf.mxu0 }
 0x6be   : > { %v5062_v6 = vcombine.low %v4755_v61, %v4901_v18  ;;  %v5486_v18 = vld [vmem:[%s7844_s3] sm:$0xff] }
 0x6bf   : > { %v6225_v10 = vpop.f32.mrf.mxu0 }
 0x6c0   : > { %v5069_v19 = vrot.slane %v5062_v6, %v7058_v4 }
 0x6c1   : > { %v4974_v38 = vpop.f32.mrf.mxu1 }
 0x6c2   : > { %v5070_v56 = vcombine.low %v4828_v27, %v4974_v38 }
 0x6c3   : > { %v6230_v15 = vpop.f32.mrf.mxu1 }
 0x6c4   : > { %v5077_v40 = vrot.slane %v5070_v56, %v7058_v4 }
 0x6c6   : > { %v5094_v16 = vcombine.low %v5069_v19, %v5077_v40  ;;  %v5095_v31 = vcombine.high %v5069_v19, %v5077_v40 }
 0x6c8   : > { %v7677_v55 = vrot.slane %v5094_v16, %v7070_v11  ;;  %v7683_v45 = vrot.slane %v5095_v31, %v7070_v11 }
 0x6ca   : > { %v5110_v24 = vcombine.low %v7674_v37, %v7677_v55  ;;  %v5111_v4 = vcombine.high %v7674_v37, %v7677_v55  ;;  %v5112_v51 = vcombine.low %v7680_v41, %v7683_v45  ;;  %v5113_v43 = vcombine.high %v7680_v41, %v7683_v45 }
 0x709   : > { %v3708_v13 = vpop.trf.xlu0 }
 0x70a   : > { %v3728_v36 = vrot.slane %v3708_v13, %v7385_v8  ;;  %v3739_v11 = vrot.slane %v3708_v13, %v7389_v21  ;;  %v3750_v0 = vrot.slane %v3708_v13, %v7393_v26  ;;  %v3761_v35 = vrot.slane %v3708_v13, %v7397_v28  ;;  %v5488_v8 = vld [vmem:[%s7844_s3 + $0x10] sm:$0xff]  ;;  %v5487_v21 = vld [vmem:[%s7844_s3 + $0x8] sm:$0xff]  ;;  %v3526_v26 = vpop.xlane.xlu1 %3525 }
 0x70b   : > { %6261 = vmatprep.subr.mxu0 %v5488_v8 }
 0x70c   : > { %3734 = vbcast.lane.b32.xlu0 %v3728_v36, 264  ;;  %3730 = vbcast.lane.b32.xlu1 %v3728_v36, 256  ;;  %v6237_v36 = vpop.f32.mrf.mxu0 }
 0x70d   : > { %6262 = vmatpush3.msra.mxu0 %v5488_v8 }
 0x70e   : > { %6263 = vmatprep.subr.mxu0 %v5487_v21  ;;  %v3529_v28 = vpop.xlane.xlu1 %3528 }
 0x70f   : > { %6264 = vmatpush3.msra.mxu0 %v5487_v21 }
 0x710   : > { %3745 = vbcast.lane.b32.xlu0 %v3739_v11, 264  ;;  %3741 = vbcast.lane.b32.xlu1 %v3739_v11, 256  ;;  %v5186_v11 = vpop.f32.mrf.mxu0 }
 0x711   : > { %6265 = vmatprep.subr.mxu0 %v5486_v18  ;;  %v5187_v42 = vadd.f32 %v5186_v11, %v5042_v63 }
 0x712   : > { %v3532_v12 = vpop.xlane.xlu1 %3531  ;;  %6266 = vmatpush3.msra.mxu0 %v5486_v18  ;;  %v6251_v8 = vpop.f32.mrf.mxu0 }
 0x714   : > { %3752 = vbcast.lane.b32.xlu0 %v3750_v0, 256  ;;  %3763 = vbcast.lane.b32.xlu1 %v3761_v35, 256 }
 0x716   : > { %v3535_v20 = vpop.xlane.xlu1 %3534 }
 0x718   : > { %3756 = vbcast.lane.b32.xlu0 %v3750_v0, 264  ;;  %v6244_v0 = vpop.f32.mrf.mxu1 }
 0x71a   : > { %v3538_v34 = vpop.xlane.xlu1 %3537 }
 0x71c   : > { %3767 = vbcast.lane.b32.xlu0 %v3761_v35, 264  ;;  %v5192_v35 = vadd.f32 %v6237_v36, %v5110_v24  ;;  %v5348_v24 = vpop.f32.mrf.mxu0 }
 0x71e   : > { %v3541_v17 = vpop.xlane.xlu1 %3540 }
 0x722   : > { %v3544_v32 = vpop.xlane.xlu1 %3543 }
 0x726   : > { %v3547_v48 = vpop.xlane.xlu1 %3546 }
 0x77e   : > { %v3735_v47 = vpop.permute.xlu0 %3734  ;;  %v3731_v49 = vpop.permute.xlu1 %3730 }
 0x77f   : > { %v3778_v1 = vadd.f32 %v3735_v47, %v3529_v28  ;;  %v3777_v54 = vadd.f32 %v3731_v49, %v3526_v26  ;;  %v5267_v26 = vpop.f32.mrf.mxu1 }
 0x781   : > { %6451 = vrcp.f32 %v3778_v1  ;;  %v6258_v63 = vpop.f32.mrf.mxu1  ;;  %v5349_v1 = vadd.f32 %v5348_v24, %v5044_v3 }
 0x782   : > { %6453 = vrcp.f32 %v3777_v54  ;;  %v3746_v58 = vpop.permute.xlu0 %3745  ;;  %v3742_v61 = vpop.permute.xlu1 %3741 }
 0x783   : > { %v3780_v30 = vadd.f32 %v3746_v58, %v3535_v20  ;;  %v3779_v9 = vadd.f32 %v3742_v61, %v3532_v12  ;;  %v5429_v37 = vpop.f32.mrf.mxu1  ;;  %v5435_v61 = vadd.f32 %v6258_v63, %v5113_v43 }
 0x784   : > { %v5430_v55 = vadd.f32 %v5429_v37, %v5045_v5  ;;  %v5627_v5 = vstv %s6795_s6  ;;  %s5882_s6 = sshll.u32 %s6599_s29, 3 }
 0x785   : > { %6455 = vrcp.f32 %v3780_v30  ;;  %s5666_s19 = sadd.s32 %s5882_s6, %s5876_s14 }
 0x786   : > { %6457 = vrcp.f32 %v3779_v9  ;;  %v3753_v22 = vpop.permute.xlu0 %3752  ;;  %v3764_v27 = vpop.permute.xlu1 %3763  ;;  %s5877_s29 = sshll.u32 %s5666_s19, 7 }
 0x787   : > { %v3781_v7 = vadd.f32 %v3753_v22, %v3538_v34  ;;  %v3783_v59 = vadd.f32 %v3764_v27, %v3544_v32  ;;  %v5273_v34 = vadd.f32 %v6244_v0, %v5111_v4  ;;  %s7770_s11 = scalar_lea.hbm %s7865_s18, %s5877_s29 }
 0x789   : > { %6459 = vrcp.f32 %v3781_v7 }
 0x78a   : > { %v3757_v62 = vpop.permute.xlu0 %3756 }
 0x78b   : > { %v3782_v33 = vadd.f32 %v3757_v62, %v3541_v17  ;;  %v5268_v17 = vadd.f32 %v5267_v26, %v5043_v2  ;;  %v5354_v2 = vadd.f32 %v6251_v8, %v5112_v51 }
 0x78d   : > { %6461 = vrcp.f32 %v3782_v33 }
 0x78e   : > { %v6452_v6 = vpop.eup %6451  ;;  %6463 = vrcp.f32 %v3783_v59  ;;  %v3768_v10 = vpop.permute.xlu0 %3767 }
 0x78f   : > { %v6454_v38 = vpop.eup %6453  ;;  %v3784_v56 = vadd.f32 %v3768_v10, %v3547_v48  ;;  %5445 = vperm.xlu0 %6402, %v6452_v6  }
 0x790   : > { %5440 = vperm.xlu1 %6401, %v6454_v38  }
 0x791   : > { %6465 = vrcp.f32 %v3784_v56 }
 0x792   : > { %v6456_v15 = vpop.eup %6455 }
 0x793   : > { %v6458_v19 = vpop.eup %6457  ;;  %5455 = vperm.xlu0 %6402, %v6456_v15  }
 0x794   : > { %5450 = vperm.xlu1 %6401, %v6458_v19  }
 0x796   : > { %v6460_v40 = vpop.eup %6459 }
 0x798   : > { %5460 = vperm.xlu1 %6401, %v6460_v40  }
 0x79a   : > { %v6462_v16 = vpop.eup %6461 }
 0x79b   : > { %v6464_v31 = vpop.eup %6463  ;;  %5465 = vperm.xlu0 %6402, %v6462_v16  }
 0x79c   : > { %5470 = vperm.xlu1 %6401, %v6464_v31  }
 0x79e   : > { %v6466_v13 = vpop.eup %6465 }
 0x79f   : > { %5475 = vperm.xlu0 %6402, %v6466_v13  }
 0x80a   : > { %v5446_v21 = vpop.permute.xlu0 %5445 }
 0x80b   : > { %v5479_v28 = vmul.f32 %v5446_v21, %v5192_v35  ;;  %v5441_v12 = vpop.permute.xlu1 %5440 }
 0x80c   : > { %v5478_v20 = vmul.f32 %v5441_v12, %v5187_v42 }
 0x80e   : > { %6267 = vmatprep.mubr.msk.f32.mxu0 %vm5497_vm0, %v5478_v20  ;;  %v5456_v32 = vpop.permute.xlu0 %5455 }
 0x80f   : > { %v5481_v48 = vmul.f32 %v5456_v32, %v5273_v34  ;;  %6268 = vmatmul.mubr.msk.f32.vlgmr.msra.gmra.mxu0 %vm5497_vm0, %v5479_v28  ;;  %v5451_v47 = vpop.permute.xlu1 %5450 }
 0x810   : > { %v5480_v49 = vmul.f32 %v5451_v47, %v5268_v17 }
 0x812   : > { %6270 = vmatprep.mubr.msk.f32.mxu0 %vm5497_vm0, %v5480_v49 }
 0x813   : > { %6271 = vmatmul.mubr.msk.f32.gmra.mxu0 %vm5497_vm0, %v5481_v48  ;;  %v5461_v44 = vpop.permute.xlu1 %5460 }
 0x814   : > { %v5482_v50 = vmul.f32 %v5461_v44, %v5349_v1 }
 0x816   : > { %6273 = vmatprep.mubr.msk.f32.mxu0 %vm5497_vm0, %v5482_v50  ;;  %v5466_v4 = vpop.permute.xlu0 %5465 }
 0x817   : > { %v5483_v3 = vmul.f32 %v5466_v4, %v5354_v2  ;;  %v5471_v54 = vpop.permute.xlu1 %5470 }
 0x818   : > { %v5484_v58 = vmul.f32 %v5471_v54, %v5430_v55 }
 0x819   : > { %6274 = vmatmul.mubr.msk.f32.gmra.mxu0 %vm5497_vm0, %v5483_v3 }
 0x81a   : > { %v5476_v30 = vpop.permute.xlu0 %5475  ;;  %6276 = vmatprep.mubr.msk.f32.mxu0 %vm5497_vm0, %v5484_v58 }
 0x81b   : > { %v5485_v51 = vmul.f32 %v5476_v30, %v5435_v61 }
 0x81d   : > { %6277 = vmatmul.mubr.msk.f32.gmra.mxu0 %vm5497_vm0, %v5485_v51 }
 0x8cf   : > { %v6269_v53 = vpop.f32.mrf.mxu0 }
 0x8d0   : > { %v5594_v9 = vadd.f32 %v6269_v53, %v5864_v14 }
 0x8d1   : > { %v5588_v22 = vpop.f32.mrf.mxu0 }
 0x8d2   : > { %v5629_v41 = vmul.f32 %v5627_v5, %v5594_v9  ;;  %v5589_v45 = vadd.f32 %v5864_v14, %v5588_v22 }
 0x8d3   : > { %v6272_v43 = vpop.f32.mrf.mxu0 }
 0x8d4   : > { %v5637_v7 = vadd.f32 %v5629_v41, %v7549_v46  ;;  %v5628_v27 = vmul.f32 %v5627_v5, %v5589_v45  ;;  %v5604_v59 = vadd.f32 %v6272_v43, %v5864_v14 }
 0x8d5   : > { %v5598_v62 = vpop.f32.mrf.mxu0 }
 0x8d6   : > { %5645 = vst.msk [vmem:[%s6799_s10 + $0x8] sm:$0xff] %vm5497_vm0, %v5637_v7  ;;  %v5636_v33 = vadd.f32 %v5628_v27, %v7561_v25  ;;  %v5631_v18 = vmul.f32 %v5627_v5, %v5604_v59  ;;  %v5599_v6 = vadd.f32 %v5864_v14, %v5598_v62 }
 0x8d8   : > { %5644 = vst.msk [vmem:[%s6799_s10] sm:$0xff] %vm5497_vm0, %v5636_v33  ;;  %v5639_v10 = vadd.f32 %v5631_v18, %v7556_v39  ;;  %v5630_v38 = vmul.f32 %v5627_v5, %v5599_v6 }
 0x8d9   : > { %v6275_v56 = vpop.f32.mrf.mxu0 }
 0x8da   : > { %5647 = vst.msk [vmem:[%s6799_s10 + $0x18] sm:$0xff] %vm5497_vm0, %v5639_v10  ;;  %v5638_v46 = vadd.f32 %v5630_v38, %v7581_v23  ;;  %v5614_v15 = vadd.f32 %v6275_v56, %v5864_v14 }
 0x8db   : > { %v5608_v19 = vpop.f32.mrf.mxu0 }
 0x8dc   : > { %5646 = vst.msk [vmem:[%s6799_s10 + $0x10] sm:$0xff] %vm5497_vm0, %v5638_v46  ;;  %v5633_v25 = vmul.f32 %v5627_v5, %v5614_v15  ;;  %v5609_v40 = vadd.f32 %v5864_v14, %v5608_v19 }
 0x8dd   : > { %v6278_v16 = vpop.f32.mrf.mxu0 }
 0x8de   : > { %v5641_v39 = vadd.f32 %v5633_v25, %v7572_v29  ;;  %v5632_v31 = vmul.f32 %v5627_v5, %v5609_v40  ;;  %v5624_v13 = vadd.f32 %v6278_v16, %v5864_v14 }
 0x8df   : > { %v5618_v23 = vpop.f32.mrf.mxu0 }
 0x8e0   : > { %5649 = vst.msk [vmem:[%s6799_s10 + $0x28] sm:$0xff] %vm5497_vm0, %v5641_v39  ;;  %v5640_v36 = vadd.f32 %v5632_v31, %v7584_v57  ;;  %v5635_v11 = vmul.f32 %v5627_v5, %v5624_v13  ;;  %v5619_v0 = vadd.f32 %v5864_v14, %v5618_v23 }
 0x8e2   : > { %5648 = vst.msk [vmem:[%s6799_s10 + $0x20] sm:$0xff] %vm5497_vm0, %v5640_v36  ;;  %v5643_v35 = vadd.f32 %v5635_v11, %v7592_v60  ;;  %v5634_v42 = vmul.f32 %v5627_v5, %v5619_v0 }
 0x8e4   : > { %5651 = vst.msk [vmem:[%s6799_s10 + $0x38] sm:$0xff] %vm5497_vm0, %v5643_v35  ;;  %v5642_v29 = vadd.f32 %v5634_v42, %v7599_v52 }
 0x8e6   : > { %5650 = vst.msk [vmem:[%s6799_s10 + $0x30] sm:$0xff] %vm5497_vm0, %v5642_v29 }
 0x8e7   : > { %6508 = shalt.err (!%p6505_p13)
}
 0x8e8   : > { %s6509_s13 = scalar_lea.hbm %s7770_s11, 1024  ;;  %s6513_s14 = scalar_lea.hbm %s7865_s18, 4096 }
 0x8e9   : > { %p6510_p0 = scmp.ne.s32.totalorder %s7770_s11, %s6509_s13  ;;  %p6514_p6 = scmp.lt.s32.totalorder %s7770_s11, %s7865_s18 }
 0x8ea   : > { %p6515_p4 = scmp.lt.s32.totalorder %s6513_s14, %s6509_s13 }
 0x8eb   : > { %p6511_p3 = pnand %p6510_p0, %p6751_p12 }
 0x8ec   : > { %p6516_p7 = por %p6515_p4, %p6514_p6 }
 0x8ed   : > { %p6512_p1 = pneg %p6511_p3 }
 0x8ef   : > { %p6517_p5 = pnand %p6516_p7, %p6512_p1 }
 0x8f1   : > { %6520 = shalt.err (!%p6517_p5)
}
 0x8f2   : > { %s6629_s7 = smov 128   ;;  %s6630_s9 = smov 8  }
 0x8f3   : > { %6289 = dma.vmem_to_hbm [thread:$0]  (%p6751_p12), %s7772_s30, 1024, %s7770_s11, %s7781_s16, %s6629_s7, %s6629_s7, %s6630_s9  }
 0x8f4 PF: > { %p6300_p8 = scmp.ge.s32.totalorder %s6615_s8, 2  ;;  %s5684_s12 = sand.u32 1, %s6575_s23  }
 0x8f5   : > { %s5685_s15 = scalar_lea.sflag [#allocation9], %s5684_s12 }
 0x8f6   : > { %p6296_p9 = pnand %p6300_p8, %p6764_p2 }
 0x8f8   : > { %p6297_p10 = pneg %p6296_p9 }
 0x8fa   : > { %6570 = dma.done.wait (%p6297_p10), %s5685_s15, 1024  }
 0x8fb   : > { %6572 = vsyncadd (%p6297_p10), %s5685_s15, 4294966272  ;;  %s23_s8 = sadd.s32 1, %s6615_s8   ;;  %s7866_s29 = sld [smem:[#allocation13_spill]] }
 0x8fc   : > { %p20_p11 = scmp.ge.s32.totalorder %s23_s8, 6   ;;  %s7867_s30 = sld [smem:[#allocation14_spill]] }
 0x8fd   : > { %s7868_s5 = sld [smem:[#allocation15_spill]]  ;;  %s7870_s23 = smov %s6579_s24 }
 0x8fe   : > { %s7869_s7 = sld [smem:[#allocation16_spill]]  ;;  %s7871_s24 = smov %s6583_s25 }
 0x8ff   : > { %s7872_s25 = smov %s6759_s22  ;;  %s7873_s26 = smov %s6591_s27 }
 0x900   : > { %s7874_s27 = smov %s6595_s28  ;;  %s7875_s28 = smov %s6756_s21 }
 0x901   :  { %22 = sbr.rel (!%p20_p11) target bundleno = 12 (0xc), region = 96 }
 0x906   :  { %5690 = vsyncpa [#allocation8], 1 }
 0x907   :  { %5692 = vsyncpa [#allocation8 + $0x1], 1 }
 0x908   :  { %5693 = vsyncpa [#allocation9], 1 }
 0x909   :  { %5695 = vsyncpa [#allocation9 + $0x1], 1 }

</bundles_post_ra>
